<compile_context>
chip_gen: v7x
topology: tpu7x:2x2x1
jax: 0.10.0
libtpu: 0.0.40
codegen_flags: <defaults>
</compile_context>

<pallas_src>
import functools

import jax
import jax.numpy as jnp
from jax.experimental import pallas as pl
from jax.experimental.pallas import tpu as pltpu

CPAD = 128  # lane-dense padded class dimension (real C = 12)


def _round_up(x, m):
    return (x + m - 1) // m * m


def _cdiv(a, b):
    return (a + b - 1) // b


def _vmem_capacity_bytes():
    """Physical VMEM per TensorCore; conservative fallback if the query fails."""
    try:
        info = pltpu.get_tpu_info()
        for attr in ("vmem_capacity_bytes", "vmem_bytes", "vmem_size_bytes"):
            v = getattr(info, attr, None)
            if isinstance(v, int) and v > 0:
                return v
    except Exception:
        pass
    return 64 * 1024 * 1024  # assume v7x-class (smallest of the three gens)


def _choose_config(B, S, H, h_itemsize):
    """Generation-aware tile sizes + VMEM limit."""
    big_vmem = _vmem_capacity_bytes() >= 100 * 1024 * 1024  # v5e / v6e (128 MiB)

    # Batch tile: 8 keeps the 'parallel' axis fine-grained (>=2 steps whenever
    # B > 8 so both v7x TensorCores get work); grow to 16 only on big-VMEM
    # chips when that still leaves >= 2 batch tiles.
    TB = 16 if (big_vmem and B >= 32) else 8
    num_b_tiles = _cdiv(max(B, 1), TB)

    # Sequence tile: largest multiple of 128 that divides round_up(S, 128),
    # stays under the per-generation cap, and keeps the double-buffered hidden
    # tiles within the VMEM budget.
    S_pad = _round_up(max(S, 1), 128)
    ts_cap = 1024 if big_vmem else 512
    hidden_budget = (48 if big_vmem else 24) * 1024 * 1024
    per_ts_bytes = max(2 * TB * H * h_itemsize, 1)   # double-buffered, per TS unit
    ts_budget = max(128, (hidden_budget // per_ts_bytes) // 128 * 128)
    max_ts = min(S_pad, ts_cap, ts_budget)

    TS = 128
    t = max_ts
    while t >= 128:
        if S_pad % t == 0:
            TS = t
            break
        t -= 128

    vmem_limit = (96 if big_vmem else 48) * 1024 * 1024
    return TB, TS, S_pad, num_b_tiles, vmem_limit


def neural_clf_kernel(h_ref, m_ref, w_ref, b_ref, o_ref, acc_ref, msum_ref,
                      *, guard_oob):
    """One (batch-tile, seq-tile) grid step of masked mean pooling + heads.

    h_ref   : (TB, TS, H)   hidden states tile (native dtype, e.g. bf16)
    m_ref   : (TB, TS)      attention-mask tile, f32, lane-dense, zero-padded
    w_ref   : (H,  CPAD)    concatenated + zero-padded head weights, f32
    b_ref   : (1,  CPAD)    concatenated + zero-padded head biases, f32
    o_ref   : (TB, CPAD)    padded logits (written once, at the last seq tile)
    acc_ref : (TB, H)  f32  running masked-sum-of-embeddings (scratch)
    msum_ref: (TB, 1)  f32  running mask sum (scratch)
    guard_oob (static bool): True when some hidden block overhangs B or S, so
        the (unspecified) overhang values must be suppressed via select.
    """
    si = pl.program_id(1)

    @pl.when(si == 0)
    def _init():
        acc_ref[...] = jnp.zeros_like(acc_ref)
        msum_ref[...] = jnp.zeros_like(msum_ref)

    m = m_ref[...]                                  # (TB, TS) f32, trusted zeros
    h = h_ref[...].astype(jnp.float32)              # (TB, TS, H) upcast in-kernel

    if guard_oob:
        # Overhanging hidden blocks contain unspecified values (possibly
        # NaN/Inf); a select against the zero-padded mask discards them.
        # Attention masks are binary, so select == multiply for valid tokens.
        hm = jnp.where(m[:, :, None] != 0.0, h, 0.0)
    else:
        hm = h * m[:, :, None]

    # MeanPooling numerator / denominator, accumulated over sequence tiles.
    acc_ref[...] += jnp.sum(hm, axis=1)                       # (TB, H)
    msum_ref[...] += jnp.sum(m, axis=1, keepdims=True)        # (TB, 1)

    @pl.when(si == pl.num_programs(1) - 1)
    def _finalize():
        denom = jnp.maximum(msum_ref[...], 1e-9)              # clamp(min=1e-9)
        pooled = acc_ref[...] / denom                         # (TB, H)
        logits = jnp.dot(pooled, w_ref[...],
                         preferred_element_type=jnp.float32) + b_ref[...]
        o_ref[...] = logits                                   # lane-dense store


@functools.partial(jax.jit, static_argnums=(4, 5, 6, 7))
def neural_clf_forward(last_hidden_state, attn_masks, w_cat, b_cat,
                       type_classes=4, polarity_classes=3,
                       tense_classes=3, certainty_classes=2):
    B, S, H = last_hidden_state.shape
    C = w_cat.shape[-1]
    h_itemsize = jnp.dtype(last_hidden_state.dtype).itemsize

    TB, TS, S_pad, num_b_tiles, vmem_limit = _choose_config(B, S, H, h_itemsize)
    num_s_tiles = S_pad // TS
    B_out = num_b_tiles * TB

    # Hot path: the (B, S, H) hidden state is NOT copied/padded. Only the tiny
    # (B, S) mask is zero-padded so every mask block read is in-bounds; the
    # hidden blocks that overhang B or S are neutralized inside the kernel.
    m = attn_masks.astype(jnp.float32)
    if (B_out, S_pad) != (B, S):
        m = jnp.pad(m, ((0, B_out - B), (0, S_pad - S)))

    # Concatenated heads, zero-padded to a lane-dense 128-wide output.
    w_pad = jnp.zeros((H, CPAD), jnp.float32).at[:, :C].set(w_cat.astype(jnp.float32))
    b_pad = jnp.zeros((1, CPAD), jnp.float32).at[:, :C].set(
        b_cat.astype(jnp.float32).reshape(1, C))

    guard_oob = (B_out != B) or (S_pad != S)
    kernel = functools.partial(neural_clf_kernel, guard_oob=guard_oob)

    grid = (num_b_tiles, num_s_tiles)

    logits_pad = pl.pallas_call(
        kernel,
        out_shape=jax.ShapeDtypeStruct((B_out, CPAD), jnp.float32),
        grid_spec=pltpu.PrefetchScalarGridSpec(
            num_scalar_prefetch=0,
            grid=grid,
            in_specs=[
                pl.BlockSpec((TB, TS, H), lambda bi, si: (bi, si, 0)),  # hidden
                pl.BlockSpec((TB, TS), lambda bi, si: (bi, si)),        # mask
                pl.BlockSpec((H, CPAD), lambda bi, si: (0, 0)),         # weights
                pl.BlockSpec((1, CPAD), lambda bi, si: (0, 0)),         # bias
            ],
            out_specs=pl.BlockSpec((TB, CPAD), lambda bi, si: (bi, 0)),
            scratch_shapes=[
                pltpu.VMEM((TB, H), jnp.float32),   # masked-sum accumulator
                pltpu.VMEM((TB, 1), jnp.float32),   # mask-sum accumulator
            ],
        ),
        compiler_params=pltpu.CompilerParams(
            dimension_semantics=("parallel", "arbitrary"),
            vmem_limit_bytes=vmem_limit,
        ),
    )(last_hidden_state, m, w_pad, b_pad)

    logits = logits_pad[:B, :C]
    s0 = type_classes
    s1 = s0 + polarity_classes
    s2 = s1 + tense_classes
    s3 = s2 + certainty_classes
    return (logits[:, :s0], logits[:, s0:s1], logits[:, s1:s2], logits[:, s2:s3])


def reference_forward(last_hidden_state, attn_masks, w_cat, b_cat):
    """Pure-JAX reference (MeanPooling + fused heads) for correctness checks.

    Note: the kernel accumulates tile-wise over the sequence, so summation
    order differs slightly from this reference (fine at 1e-4 tolerance).
    """
    h = last_hidden_state.astype(jnp.float32)
    m = attn_masks.astype(jnp.float32)[:, :, None]
    summed = jnp.sum(h * m, axis=1)
    denom = jnp.maximum(jnp.sum(m, axis=1), 1e-9)
    pooled = summed / denom
    return pooled @ w_cat.astype(jnp.float32) + b_cat.astype(jnp.float32).reshape(1, -1)


if __name__ == "__main__":
    TYPE_C, POL_C, TENSE_C, CERT_C = 4, 3, 3, 2
    C = TYPE_C + POL_C + TENSE_C + CERT_C
    INIT_RANGE = 0.02  # BERT-style config.initializer_range
    VOCAB = 64
    H = 32  # demo hidden size (real KR-SBERT H=768, a lane-dense multiple of 128)

    key = jax.random.PRNGKey(0)
    k_ids, k_emb, k_w, k_ids2, k_mask2, k_ids3, k_mask3 = jax.random.split(key, 7)

    # Deterministic stand-in for the pretrained backbone: embedding lookup.
    emb_table = jax.random.normal(k_emb, (VOCAB, H), dtype=jnp.float32)

    # Head params: normal(0, initializer_range) weights, zero biases,
    # concatenated along the class axis (matches NeuralCLF._init_weights).
    w_cat = INIT_RANGE * jax.random.normal(k_w, (H, C), dtype=jnp.float32)
    b_cat = jnp.zeros((1, C), dtype=jnp.float32)

    # ---------------- test 1: tiny shapes, single-tile overhang path --------
    B, S = 2, 8
    input_ids = jax.random.randint(k_ids, (B, S), 0, VOCAB, dtype=jnp.int32)
    lens = jnp.array([S, S - 3], dtype=jnp.int32)
    attn_masks = (jnp.arange(S)[None, :] < lens[:, None]).astype(jnp.int32)
    last_hidden_state = emb_table[input_ids].astype(jnp.bfloat16)     # (B, S, H)

    outs = neural_clf_forward(last_hidden_state, attn_masks, w_cat, b_cat,
                              TYPE_C, POL_C, TENSE_C, CERT_C)
    outs = jax.block_until_ready(outs)
    got = jnp.concatenate(outs, axis=1)
    ref = reference_forward(last_hidden_state, attn_masks, w_cat, b_cat)
    assert got.shape == (B, C)
    assert jnp.all(jnp.isfinite(got))
    assert jnp.allclose(got, ref, atol=1e-4, rtol=1e-4)

    # ------- test 2: serving-like shape (B=10, S=300), no hidden pad --------
    B2, S2 = 10, 300
    input_ids2 = jax.random.randint(k_ids2, (B2, S2), 0, VOCAB, dtype=jnp.int32)
    attn_masks2 = jax.random.bernoulli(k_mask2, 0.7, (B2, S2)).astype(jnp.int32)
    hidden2 = emb_table[input_ids2].astype(jnp.bfloat16)

    outs2 = neural_clf_forward(hidden2, attn_masks2, w_cat, b_cat,
                               TYPE_C, POL_C, TENSE_C, CERT_C)
    outs2 = jax.block_until_ready(outs2)
    got2 = jnp.concatenate(outs2, axis=1)
    ref2 = reference_forward(hidden2, attn_masks2, w_cat, b_cat)
    assert got2.shape == (B2, C)
    assert jnp.all(jnp.isfinite(got2))
    assert jnp.allclose(got2, ref2, atol=1e-4, rtol=1e-4)

    # ------- test 3: exactly-tiling shapes, fast (multiply) path ------------
    B3, S3 = 16, 256
    input_ids3 = jax.random.randint(k_ids3, (B3, S3), 0, VOCAB, dtype=jnp.int32)
    attn_masks3 = jax.random.bernoulli(k_mask3, 0.8, (B3, S3)).astype(jnp.int32)
    hidden3 = emb_table[input_ids3].astype(jnp.bfloat16)

    outs3 = neural_clf_forward(hidden3, attn_masks3, w_cat, b_cat,
                               TYPE_C, POL_C, TENSE_C, CERT_C)
    outs3 = jax.block_until_ready(outs3)
    got3 = jnp.concatenate(outs3, axis=1)
    ref3 = reference_forward(hidden3, attn_masks3, w_cat, b_cat)
    assert got3.shape == (B3, C)
    assert jnp.allclose(got3, ref3, atol=1e-4, rtol=1e-4)

    print("KERNEL_OK")
</pallas_src>

<mosaic_0001>
module attributes {stable_mosaic.version = 11 : i64} {
  func.func @neural_clf_kernel(%arg0: i32, %arg1: i32, %arg2: memref<8x128x32xbf16, #tpu.memory_space<vmem>>, %arg3: memref<8x128xf32, #tpu.memory_space<vmem>>, %arg4: memref<32x128xf32, #tpu.memory_space<vmem>>, %arg5: memref<1x128xf32, #tpu.memory_space<vmem>>, %arg6: memref<8x128xf32, #tpu.memory_space<vmem>>, %arg7: memref<8x32xf32, #tpu.memory_space<vmem>>, %arg8: memref<8x1xf32, #tpu.memory_space<vmem>>) attributes {dimension_semantics = [#tpu.dimension_semantics<parallel>, #tpu.dimension_semantics<arbitrary>], iteration_bounds = array<i64: 1, 1>, scalar_prefetch = 0 : i64, scratch_operands = 2 : i64, tpu.core_type = #tpu.core_type<tc>, window_params = [{transform_indices = @transform_0, window_bounds = array<i64: 8, 128, 32>}, {transform_indices = @transform_1, window_bounds = array<i64: 8, 128>}, {pipeline_mode = #tpu.pipeline_mode<synchronous>, transform_indices = @transform_2, window_bounds = array<i64: 32, 128>}, {pipeline_mode = #tpu.pipeline_mode<synchronous>, transform_indices = @transform_3, window_bounds = array<i64: 1, 128>}, {transform_indices = @transform_4, window_bounds = array<i64: 8, 128>}]} {
    %c0_i32 = arith.constant 0 : i32
    %0 = arith.cmpi eq, %arg1, %c0_i32 : i32
    %1 = arith.extui %0 : i1 to i32
    %c0_i32_0 = arith.constant 0 : i32
    %2 = arith.cmpi ne, %1, %c0_i32_0 : i32
    scf.if %2 {
      %cst_18 = arith.constant 0.000000e+00 : f32
      %25 = vector.broadcast %cst_18 : f32 to vector<8x32xf32>
      %c0_19 = arith.constant 0 : index
      %c0_20 = arith.constant 0 : index
      %26 = vector.load %arg7[%c0_19, %c0_20] : memref<8x32xf32, #tpu.memory_space<vmem>>, vector<8x32xf32>
      tpu.vector_store %arg7[%c0_19, %c0_20], %25 {strides = array<i32>} : memref<8x32xf32, #tpu.memory_space<vmem>>, vector<8x32xf32>,
      %cst_21 = arith.constant 0.000000e+00 : f32
      %27 = vector.broadcast %cst_21 : f32 to vector<8x1xf32>
      %c0_22 = arith.constant 0 : index
      %c0_23 = arith.constant 0 : index
      %28 = vector.load %arg8[%c0_22, %c0_23] : memref<8x1xf32, #tpu.memory_space<vmem>>, vector<8x1xf32>
      tpu.vector_store %arg8[%c0_22, %c0_23], %27 {strides = array<i32>} : memref<8x1xf32, #tpu.memory_space<vmem>>, vector<8x1xf32>,
    } else {
    }
    %c0 = arith.constant 0 : index
    %c0_1 = arith.constant 0 : index
    %3 = vector.load %arg3[%c0, %c0_1] : memref<8x128xf32, #tpu.memory_space<vmem>>, vector<8x128xf32>
    %c0_2 = arith.constant 0 : index
    %c0_3 = arith.constant 0 : index
    %c0_4 = arith.constant 0 : index
    %4 = vector.load %arg2[%c0_2, %c0_3, %c0_4] : memref<8x128x32xbf16, #tpu.memory_space<vmem>>, vector<8x128x32xbf16>
    %5 = arith.extf %4 : vector<8x128x32xbf16> to vector<8x128x32xf32>
    %6 = vector.shape_cast %3 : vector<8x128xf32> to vector<8x128x1xf32>
    %cst = arith.constant 0.000000e+00 : f32
    %7 = vector.broadcast %cst : f32 to vector<8x128x1xf32>
    %8 = arith.cmpf one, %6, %7 : vector<8x128x1xf32>
    %cst_5 = arith.constant 0.000000e+00 : f32
    %9 = vector.shape_cast %8 : vector<8x128x1xi1> to vector<8x128x1xi1>
    %10 = vector.broadcast %9 : vector<8x128x1xi1> to vector<8x128x32xi1>
    %11 = vector.broadcast %cst_5 : f32 to vector<8x128x32xf32>
    %12 = arith.select %10, %5, %11 : vector<8x128x32xi1>, vector<8x128x32xf32>
    %c0_6 = arith.constant 0 : index
    %c0_7 = arith.constant 0 : index
    %13 = vector.load %arg7[%c0_6, %c0_7] : memref<8x32xf32, #tpu.memory_space<vmem>>, vector<8x32xf32>
    %cst_8 = arith.constant dense<0.000000e+00> : vector<8x32xf32>
    %14 = vector.multi_reduction <add>, %12, %cst_8 [1] : vector<8x128x32xf32> to vector<8x32xf32>
    %15 = arith.addf %13, %14 : vector<8x32xf32>
    %c0_9 = arith.constant 0 : index
    %c0_10 = arith.constant 0 : index
    %16 = vector.load %arg7[%c0_9, %c0_10] : memref<8x32xf32, #tpu.memory_space<vmem>>, vector<8x32xf32>
    tpu.vector_store %arg7[%c0_9, %c0_10], %15 {strides = array<i32>} : memref<8x32xf32, #tpu.memory_space<vmem>>, vector<8x32xf32>,
    %c0_11 = arith.constant 0 : index
    %c0_12 = arith.constant 0 : index
    %17 = vector.load %arg8[%c0_11, %c0_12] : memref<8x1xf32, #tpu.memory_space<vmem>>, vector<8x1xf32>
    %cst_13 = arith.constant dense<0.000000e+00> : vector<8xf32>
    %18 = vector.multi_reduction <add>, %3, %cst_13 [1] : vector<8x128xf32> to vector<8xf32>
    %19 = vector.shape_cast %18 : vector<8xf32> to vector<8x1xf32>
    %20 = arith.addf %17, %19 : vector<8x1xf32>
    %c0_14 = arith.constant 0 : index
    %c0_15 = arith.constant 0 : index
    %21 = vector.load %arg8[%c0_14, %c0_15] : memref<8x1xf32, #tpu.memory_space<vmem>>, vector<8x1xf32>
    tpu.vector_store %arg8[%c0_14, %c0_15], %20 {strides = array<i32>} : memref<8x1xf32, #tpu.memory_space<vmem>>, vector<8x1xf32>,
    %c0_i32_16 = arith.constant 0 : i32
    %22 = arith.cmpi eq, %arg1, %c0_i32_16 : i32
    %23 = arith.extui %22 : i1 to i32
    %c0_i32_17 = arith.constant 0 : i32
    %24 = arith.cmpi ne, %23, %c0_i32_17 : i32
    scf.if %24 {
      %c0_18 = arith.constant 0 : index
      %c0_19 = arith.constant 0 : index
      %25 = vector.load %arg8[%c0_18, %c0_19] : memref<8x1xf32, #tpu.memory_space<vmem>>, vector<8x1xf32>
      %cst_20 = arith.constant 9.99999971E-10 : f32
      %26 = vector.broadcast %cst_20 : f32 to vector<8x1xf32>
      %27 = arith.maximumf %25, %26 : vector<8x1xf32>
      %c0_21 = arith.constant 0 : index
      %c0_22 = arith.constant 0 : index
      %28 = vector.load %arg7[%c0_21, %c0_22] : memref<8x32xf32, #tpu.memory_space<vmem>>, vector<8x32xf32>
      %29 = vector.broadcast %27 : vector<8x1xf32> to vector<8x32xf32>
      %30 = arith.divf %28, %29 : vector<8x32xf32>
      %c0_23 = arith.constant 0 : index
      %c0_24 = arith.constant 0 : index
      %31 = vector.load %arg4[%c0_23, %c0_24] : memref<32x128xf32, #tpu.memory_space<vmem>>, vector<32x128xf32>
      %cst_25 = arith.constant dense<0.000000e+00> : vector<8x128xf32>
      %32 = tpu.matmul %30, %31, %cst_25 {dimension_numbers = #tpu.dot_dimension_numbers<[1], [0], [0], [1], [0, 0, 1, 1], [], []>} : vector<8x32xf32>, vector<32x128xf32>, vector<8x128xf32> -> vector<8x128xf32>
      %c0_26 = arith.constant 0 : index
      %c0_27 = arith.constant 0 : index
      %33 = vector.load %arg5[%c0_26, %c0_27] : memref<1x128xf32, #tpu.memory_space<vmem>>, vector<1x128xf32>
      %34 = vector.broadcast %33 : vector<1x128xf32> to vector<8x128xf32>
      %35 = arith.addf %32, %34 : vector<8x128xf32>
      %c0_28 = arith.constant 0 : index
      %c0_29 = arith.constant 0 : index
      %36 = vector.load %arg6[%c0_28, %c0_29] : memref<8x128xf32, #tpu.memory_space<vmem>>, vector<8x128xf32>
      tpu.vector_store %arg6[%c0_28, %c0_29], %35 {strides = array<i32>} : memref<8x128xf32, #tpu.memory_space<vmem>>, vector<8x128xf32>,
    } else {
    }
    return
  }
  func.func @transform_0(%arg0: i32, %arg1: i32) -> (i32, i32, i32) {
    %c0_i32 = arith.constant 0 : i32
    %c0_i32_0 = arith.constant 0 : i32
    return %arg0, %arg1, %c0_i32 : i32, i32, i32
  }
  func.func @transform_1(%arg0: i32, %arg1: i32) -> (i32, i32) {
    %c0_i32 = arith.constant 0 : i32
    return %arg0, %arg1 : i32, i32
  }
  func.func @transform_2(%arg0: i32, %arg1: i32) -> (i32, i32) {
    %c0_i32 = arith.constant 0 : i32
    %c0_i32_0 = arith.constant 0 : i32
    %c0_i32_1 = arith.constant 0 : i32
    return %c0_i32, %c0_i32_0 : i32, i32
  }
  func.func @transform_3(%arg0: i32, %arg1: i32) -> (i32, i32) {
    %c0_i32 = arith.constant 0 : i32
    %c0_i32_0 = arith.constant 0 : i32
    %c0_i32_1 = arith.constant 0 : i32
    return %c0_i32, %c0_i32_0 : i32, i32
  }
  func.func @transform_4(%arg0: i32, %arg1: i32) -> (i32, i32) {
    %c0_i32 = arith.constant 0 : i32
    %c0_i32_0 = arith.constant 0 : i32
    return %arg0, %c0_i32 : i32, i32
  }
}

</mosaic_0001>

<bundles_post_ra>
// kernel: neural_clf_forward.1
= control target key start
LH: loop header
LB: loop body
LE: loop exit
PB: predicated region body
PF: predicated region fallthrough
CT: control target
= control target key end

     0   :  { %v327_v1 = vlaneseq  ;;  %vm66_vm0 = vcmask 261120   ;;  %vm68_vm1 = vcmask 7168   ;;  %v3165_v9 = vmov 0.0   ;;  %v2331_v44 = vld [vmem:[#allocation4 + $0x80] sm:$0xff]   ;;  %v2339_v47 = vld [vmem:[#allocation4 + $0x8] sm:$0xff]   ;;  %v2414_v62 = vld [vmem:[#allocation4 + $0x110] sm:$0xff]   ;;  %s3160_s0 = inlined_call_operand.vmem [shape: bf16[2,8,32], index: 0, kind: input, shape index: {}]   ;;  %s3161_s1 = inlined_call_operand.vmem [shape: f32[8,128], index: 1, kind: input, shape index: {}]   ;;  %s3162_s2 = inlined_call_operand.vmem [shape: f32[32,128], index: 2, kind: input, shape index: {}]   ;;  %s3163_s3 = inlined_call_operand.vmem [shape: f32[1,128], index: 3, kind: input, shape index: {}]   ;;  %s3164_s4 = inlined_call_operand.vmem [shape: f32[8,128], index: 4, kind: output, shape index: {}]  }
   0x1   :  { %v70_v0 = vld [vmem:[%s3161_s1] sm:$0xff]  ;;  %67 = vst.msk [vmem:[#allocation2] sm:$0xff] %vm66_vm0, %v3165_v9  ;;  %v2161_v27 = vmov 0   ;;  %v2341_v48 = vld [vmem:[#allocation4 + $0x48] sm:$0xff]   ;;  %v2343_v49 = vld [vmem:[#allocation4 + $0xc0] sm:$0xff]   ;;  %v3178_v63 = vunpack.c.h.bf16 %v2331_v44 }
   0x2   :  { %v26_v2 = vld [vmem:[%s3160_s0] sm:$0xf]  ;;  %v28_v3 = vld [vmem:[%s3160_s0 + $0x4] sm:$0xf]  ;;  %1699 = vadd.xlane.f32.xlu0 %v70_v0  ;;  %v328_v4 = vshrl.u32 %v327_v1, 7  ;;  %69 = vst.msk [vmem:[#allocation3] sm:$0xff] %vm68_vm1, %v3165_v9 }
   0x3   :  { %27 = vst [vmem:[#allocation4] sm:$0xf] %v26_v2  ;;  %29 = vst [vmem:[#allocation4 + $0x40] sm:$0xf] %v28_v3  ;;  %2157 = vset.pattern.permute.xlu0 %v2161_v27  ;;  %v2346_v51 = vld [vmem:[#allocation4 + $0x100] sm:$0xff]   ;;  %v2348_v52 = vld [vmem:[#allocation4 + $0x88] sm:$0xff]  }
   0x4   :  { %v329_v5 = vsub.s32 0, %v328_v4  ;;  %v396_v6 = vsub.s32 1, %v328_v4  ;;  %v463_v10 = vsub.s32 2, %v328_v4  ;;  %v530_v12 = vsub.s32 3, %v328_v4  ;;  %v2358_v59 = vld [vmem:[#allocation4 + $0xc8] sm:$0xff]   ;;  %v2360_v60 = vld [vmem:[#allocation4 + $0x140] sm:$0xff]  }
   0x5   :  { %v597_v14 = vsub.s32 4, %v328_v4  ;;  %v664_v16 = vsub.s32 5, %v328_v4  ;;  %v731_v18 = vsub.s32 6, %v328_v4  ;;  %v798_v20 = vsub.s32 7, %v328_v4  ;;  %v2367_v1 = vld [vmem:[#allocation4 + $0x108] sm:$0xff]   ;;  %v2370_v2 = vld [vmem:[#allocation4 + $0x180] sm:$0xff]  }
   0x6   :  { %v2198_v7 = vrot.slane %v70_v0, %v329_v5  ;;  %v2200_v8 = vrot.slane %v70_v0, %v396_v6  ;;  %v2208_v11 = vrot.slane %v70_v0, %v463_v10  ;;  %v2212_v13 = vrot.slane %v70_v0, %v530_v12  ;;  %v2376_v10 = vld [vmem:[#allocation4 + $0x50] sm:$0xff]   ;;  %v2408_v3 = vld [vmem:[#allocation4 + $0x1c8] sm:$0xff]   ;;  %3175 = vst [vmem:[#allocation6_spill] sm:$0xff] %v2414_v62  ;;  %v2416_v5 = vld [vmem:[#allocation4 + $0x18] sm:$0xff]  }
   0x7   :  { %v2218_v15 = vrot.slane %v70_v0, %v597_v14  ;;  %v2224_v17 = vrot.slane %v70_v0, %v664_v16  ;;  %v2230_v19 = vrot.slane %v70_v0, %v731_v18  ;;  %v2238_v21 = vrot.slane %v70_v0, %v798_v20  ;;  %v2378_v12 = vld [vmem:[#allocation4 + $0x10] sm:$0xff]   ;;  %v2380_v14 = vld [vmem:[#allocation4 + $0x148] sm:$0xff]   ;;  %v2426_v55 = vld [vmem:[#allocation4 + $0x58] sm:$0xff]  }
   0x8   :  { %336 = vbcast.lane.b32.xlu1 %v2198_v7, 264  ;;  %v2397_v18 = vld [vmem:[#allocation4 + $0x90] sm:$0xff]   ;;  %v2399_v20 = vld [vmem:[#allocation4 + $0x188] sm:$0xff]   ;;  %v2444_v56 = vld [vmem:[#allocation4 + $0x98] sm:$0xff]  }
   0x9   :  { %v1698_v28 = vld [vmem:[#allocation3] sm:$0xff]  ;;  %3174 = vst [vmem:[#allocation5_spill] sm:$0xff] %v2399_v20  ;;  %v2401_v27 = vld [vmem:[#allocation4 + $0xd0] sm:$0xff]   ;;  %3177 = vst [vmem:[#allocation8_spill] sm:$0xff] %v2444_v56  ;;  %v3182_v20 = vunpack.c.l.bf16 %v2341_v48  ;;  %v3183_v56 = vunpack.c.l.bf16 %v2339_v47 }
   0xa   :  { %v2334_v45 = vld [vmem:[#allocation4] sm:$0xff]   ;;  %v2442_v58 = vld [vmem:[#allocation4 + $0x150] sm:$0xff]  }
   0xb   :  { %v2336_v46 = vld [vmem:[#allocation4 + $0x40] sm:$0xff]   ;;  %3176 = vst [vmem:[#allocation7_spill] sm:$0xff] %v2442_v58 }
   0xc   :  { %399 = vbcast.lane.b32.xlu1 %v2200_v8, 256  ;;  %v1847_v57 = vunpack.c.h.bf16 %v2336_v46 }
  0x10   :  { %403 = vbcast.lane.b32.xlu1 %v2200_v8, 264 }
  0x14   :  { %466 = vbcast.lane.b32.xlu1 %v2208_v11, 256 }
  0x18   :  { %332 = vbcast.lane.b32.xlu0 %v2198_v7, 256  ;;  %470 = vbcast.lane.b32.xlu1 %v2208_v11, 264 }
  0x1c   :  { %533 = vbcast.lane.b32.xlu0 %v2212_v13, 256  ;;  %340 = vbcast.lane.b32.xlu1 %v2198_v7, 272 }
  0x20   :  { %474 = vbcast.lane.b32.xlu0 %v2208_v11, 272  ;;  %407 = vbcast.lane.b32.xlu1 %v2200_v8, 272 }
  0x24   :  { %604 = vbcast.lane.b32.xlu0 %v2218_v15, 264  ;;  %537 = vbcast.lane.b32.xlu1 %v2212_v13, 264 }
  0x28   :  { %411 = vbcast.lane.b32.xlu0 %v2200_v8, 280  ;;  %600 = vbcast.lane.b32.xlu1 %v2218_v15, 256 }
  0x2c   :  { %667 = vbcast.lane.b32.xlu0 %v2224_v17, 256  ;;  %344 = vbcast.lane.b32.xlu1 %v2198_v7, 280 }
  0x30   :  { %478 = vbcast.lane.b32.xlu0 %v2208_v11, 280  ;;  %541 = vbcast.lane.b32.xlu1 %v2212_v13, 272 }
  0x34   :  { %734 = vbcast.lane.b32.xlu0 %v2230_v19, 256  ;;  %671 = vbcast.lane.b32.xlu1 %v2224_v17, 264 }
  0x38   :  { %348 = vbcast.lane.b32.xlu0 %v2198_v7, 288  ;;  %608 = vbcast.lane.b32.xlu1 %v2218_v15, 272 }
  0x3c   :  { %545 = vbcast.lane.b32.xlu0 %v2212_v13, 280  ;;  %738 = vbcast.lane.b32.xlu1 %v2230_v19, 264 }
  0x40   :  { %801 = vbcast.lane.b32.xlu0 %v2238_v21, 256  ;;  %415 = vbcast.lane.b32.xlu1 %v2200_v8, 288 }
  0x44   :  { %482 = vbcast.lane.b32.xlu0 %v2208_v11, 288  ;;  %675 = vbcast.lane.b32.xlu1 %v2224_v17, 272 }
  0x48   :  { %742 = vbcast.lane.b32.xlu0 %v2230_v19, 272  ;;  %805 = vbcast.lane.b32.xlu1 %v2238_v21, 264 }
  0x4c   :  { %419 = vbcast.lane.b32.xlu0 %v2200_v8, 296  ;;  %612 = vbcast.lane.b32.xlu1 %v2218_v15, 280 }
  0x50   :  { %679 = vbcast.lane.b32.xlu0 %v2224_v17, 280  ;;  %352 = vbcast.lane.b32.xlu1 %v2198_v7, 296 }
  0x54   :  { %486 = vbcast.lane.b32.xlu0 %v2208_v11, 296  ;;  %549 = vbcast.lane.b32.xlu1 %v2212_v13, 288 }
  0x58   :  { %746 = vbcast.lane.b32.xlu0 %v2230_v19, 280  ;;  %809 = vbcast.lane.b32.xlu1 %v2238_v21, 272 }
  0x5c   :  { %423 = vbcast.lane.b32.xlu0 %v2200_v8, 304  ;;  %616 = vbcast.lane.b32.xlu1 %v2218_v15, 288 }
  0x60   :  { %683 = vbcast.lane.b32.xlu0 %v2224_v17, 288  ;;  %356 = vbcast.lane.b32.xlu1 %v2198_v7, 304 }
  0x64   :  { %490 = vbcast.lane.b32.xlu0 %v2208_v11, 304  ;;  %553 = vbcast.lane.b32.xlu1 %v2212_v13, 296 }
  0x68   :  { %750 = vbcast.lane.b32.xlu0 %v2230_v19, 288  ;;  %813 = vbcast.lane.b32.xlu1 %v2238_v21, 280 }
  0x6c   :  { %427 = vbcast.lane.b32.xlu0 %v2200_v8, 312  ;;  %620 = vbcast.lane.b32.xlu1 %v2218_v15, 296 }
  0x70   :  { %687 = vbcast.lane.b32.xlu0 %v2224_v17, 296  ;;  %360 = vbcast.lane.b32.xlu1 %v2198_v7, 312 }
  0x74   :  { %494 = vbcast.lane.b32.xlu0 %v2208_v11, 312  ;;  %557 = vbcast.lane.b32.xlu1 %v2212_v13, 304 }
  0x78   :  { %754 = vbcast.lane.b32.xlu0 %v2230_v19, 296  ;;  %817 = vbcast.lane.b32.xlu1 %v2238_v21, 288 }
  0x7a   :  { %v2272_v22 = vpop.permute.xlu1 %336 }
  0x7b   :  { %vm864_vm5 = vcmp.ne.f32.partialorder %v2272_v22, 0.0  ;;  %v3184_v22 = vunpack.c.l.bf16 %v2334_v45 }
  0x7c   :  { %431 = vbcast.lane.b32.xlu0 %v2200_v8, 320  ;;  %624 = vbcast.lane.b32.xlu1 %v2218_v15, 304 }
  0x7e   :  { %v2276_v23 = vpop.permute.xlu1 %399 }
  0x7f   :  { %vm879_vm4 = vcmp.ne.f32.partialorder %v2276_v23, 0.0  ;;  %v3181_v23 = vunpack.c.l.bf16 %v2331_v44 }
  0x80   :  { %691 = vbcast.lane.b32.xlu0 %v2224_v17, 304  ;;  %364 = vbcast.lane.b32.xlu1 %v2198_v7, 320 }
  0x82   :  { %v2280_v24 = vpop.permute.xlu1 %403 }
  0x83   :  { %vm880_vm2 = vcmp.ne.f32.partialorder %v2280_v24, 0.0 }
  0x84   :  { %498 = vbcast.lane.b32.xlu0 %v2208_v11, 320  ;;  %561 = vbcast.lane.b32.xlu1 %v2212_v13, 312  ;;  %v1264_v0 = vsel %vm880_vm2, %v1847_v57, 0.0  ;;  %v3179_v57 = vunpack.c.l.bf16 %v2336_v46 }
  0x85   :  { %v1415_v46 = vsel %vm66_vm0, %v1264_v0, 0.0 }
  0x86   :  { %v2284_v25 = vpop.permute.xlu1 %466  ;;  %v1263_v4 = vsel %vm879_vm4, %v3179_v57, 0.0 }
  0x87   :  { %vm895_vm6 = vcmp.ne.f32.partialorder %v2284_v25, 0.0  ;;  %v1827_v25 = vunpack.c.h.bf16 %v2416_v5  ;;  %v1414_v44 = vsel %vm66_vm0, %v1263_v4, 0.0 }
  0x88   :  { %758 = vbcast.lane.b32.xlu0 %v2230_v19, 304  ;;  %821 = vbcast.lane.b32.xlu1 %v2238_v21, 296  ;;  %v1279_v57 = vsel %vm895_vm6, %v3181_v23, 0.0 }
  0x8a   :  { %v2288_v26 = vpop.permute.xlu1 %470 }
  0x8b   :  { %vm896_vm3 = vcmp.ne.f32.partialorder %v2288_v26, 0.0 }
  0x8c   :  { %435 = vbcast.lane.b32.xlu0 %v2200_v8, 328  ;;  %628 = vbcast.lane.b32.xlu1 %v2218_v15, 312  ;;  %v1280_v61 = vsel %vm896_vm3, %v3178_v63, 0.0 }
  0x8d   :  { %v1452_v63 = vsel %vm66_vm0, %v1280_v61, 0.0  ;;  %v1451_v61 = vsel %vm66_vm0, %v1279_v57, 0.0 }
  0x8e   :  { %v2292_v30 = vpop.permute.xlu1 %340  ;;  %v1453_v23 = vadd.f32 %v1452_v63, %v1451_v61 }
  0x8f   :  { %v1700_v29 = vpop.xlane.xlu0 %1699  ;;  %vm865_vm8 = vcmp.ne.f32.partialorder %v2292_v30, 0.0  ;;  %v2473_v30 = vld [vmem:[#allocation4 + $0x190] sm:$0xff]  }
  0x90   :  { %v1701_v31 = vadd.f32 %v1700_v29, %v1698_v28  ;;  %695 = vbcast.lane.b32.xlu0 %v2224_v17, 312  ;;  %368 = vbcast.lane.b32.xlu1 %v2198_v7, 328  ;;  %v1249_v58 = vsel %vm865_vm8, %v3183_v56, 0.0 }
  0x91   :  { %v1380_v4 = vsel %vm66_vm0, %v1249_v58, 0.0 }
  0x92   :  { %1703 = vst.msk [vmem:[#allocation3] sm:$0xff] %vm68_vm1, %v1701_v31  ;;  %v2297_v32 = vpop.permute.xlu1 %407  ;;  %v2390_v31 = vld [vmem:[#allocation4 + $0x1c0] sm:$0xff]  }
  0x93   :  { %v2299_v33 = vpop.permute.xlu0 %332  ;;  %vm881_vm7 = vcmp.ne.f32.partialorder %v2297_v32, 0.0  ;;  %v3186_v32 = vunpack.c.l.bf16 %v2343_v49 }
  0x94   :  { %502 = vbcast.lane.b32.xlu0 %v2208_v11, 328  ;;  %565 = vbcast.lane.b32.xlu1 %v2212_v13, 320  ;;  %vm863_vm9 = vcmp.ne.f32.partialorder %v2299_v33, 0.0  ;;  %v3180_v33 = vunpack.c.h.bf16 %v2334_v45  ;;  %v1265_v26 = vsel %vm881_vm7, %v3182_v20, 0.0  ;;  %v1416_v45 = vadd.f32 %v1415_v46, %v1414_v44 }
  0x95   :  { %v1417_v20 = vsel %vm66_vm0, %v1265_v26, 0.0 }
  0x96   :  { %v2303_v34 = vpop.permute.xlu1 %537  ;;  %v1248_v24 = vsel %vm864_vm5, %v3180_v33, 0.0  ;;  %v1247_v33 = vsel %vm863_vm9, %v3184_v22, 0.0  ;;  %v1418_v63 = vadd.f32 %v1417_v20, %v1416_v45  ;;  %v3192_v45 = vunpack.c.h.bf16 %v2341_v48 }
  0x97   :  { %v2305_v35 = vpop.permute.xlu0 %533  ;;  %vm912_vm10 = vcmp.ne.f32.partialorder %v2303_v34, 0.0  ;;  %v1378_v56 = vsel %vm66_vm0, %v1248_v24, 0.0  ;;  %v1377_v34 = vsel %vm66_vm0, %v1247_v33, 0.0  ;;  %v3189_v33 = vunpack.c.h.bf16 %v2339_v47 }
  0x98   :  { %762 = vbcast.lane.b32.xlu0 %v2230_v19, 312  ;;  %825 = vbcast.lane.b32.xlu1 %v2238_v21, 304  ;;  %vm911_vm11 = vcmp.ne.f32.partialorder %v2305_v35, 0.0  ;;  %v3185_v35 = vunpack.c.h.bf16 %v2343_v49  ;;  %v3187_v49 = vunpack.c.l.bf16 %v2348_v52  ;;  %v3193_v47 = vunpack.c.h.bf16 %v2360_v60 }
  0x99   :  { %v1295_v24 = vsel %vm911_vm11, %v3186_v32, 0.0 }
  0x9a   :  { %v2309_v36 = vpop.permute.xlu1 %600  ;;  %v1296_v22 = vsel %vm912_vm10, %v3185_v35, 0.0  ;;  %v3194_v35 = vunpack.c.l.bf16 %v2360_v60  ;;  %v3195_v60 = vunpack.c.l.bf16 %v2367_v1 }
  0x9b   :  { %v2311_v37 = vpop.permute.xlu0 %474  ;;  %vm927_vm13 = vcmp.ne.f32.partialorder %v2309_v36, 0.0  ;;  %v1489_v57 = vsel %vm66_vm0, %v1296_v22, 0.0 }
  0x9c   :  { %439 = vbcast.lane.b32.xlu0 %v2200_v8, 336  ;;  %632 = vbcast.lane.b32.xlu1 %v2218_v15, 320  ;;  %vm897_vm12 = vcmp.ne.f32.partialorder %v2311_v37, 0.0  ;;  %v1379_v37 = vadd.f32 %v1378_v56, %v1377_v34 }
  0x9d   :  { %v1281_v58 = vsel %vm897_vm12, %v3187_v49, 0.0 }
  0x9e   :  { %v2315_v38 = vpop.permute.xlu1 %344  ;;  %v1454_v36 = vsel %vm66_vm0, %v1281_v58, 0.0 }
  0x9f   :  { %v2317_v39 = vpop.permute.xlu0 %604  ;;  %vm866_vm14 = vcmp.ne.f32.partialorder %v2315_v38, 0.0 }
  0xa0   :  { %699 = vbcast.lane.b32.xlu0 %v2224_v17, 320  ;;  %372 = vbcast.lane.b32.xlu1 %v2198_v7, 336  ;;  %vm928_vm15 = vcmp.ne.f32.partialorder %v2317_v39, 0.0  ;;  %v1488_v39 = vsel %vm66_vm0, %v1295_v24, 0.0  ;;  %v1250_v44 = vsel %vm866_vm14, %v3189_v33, 0.0  ;;  %v1381_v24 = vadd.f32 %v1380_v4, %v1379_v37 }
  0xa1   :  { %v1490_v22 = vadd.f32 %v1489_v57, %v1488_v39  ;;  %v1382_v49 = vsel %vm66_vm0, %v1250_v44, 0.0  ;;  %v3196_v37 = vunpack.c.h.bf16 %v2348_v52 }
  0xa2   :  { %v2321_v40 = vpop.permute.xlu1 %541 }
  0xa3   :  { %v2323_v41 = vpop.permute.xlu0 %411  ;;  %vm913_vm1 = vcmp.ne.f32.partialorder %v2321_v40, 0.0  ;;  %v3188_v40 = vunpack.c.l.bf16 %v2346_v51 }
  0xa4   :  { %506 = vbcast.lane.b32.xlu0 %v2208_v11, 336  ;;  %569 = vbcast.lane.b32.xlu1 %v2212_v13, 328  ;;  %vm882_vm2 = vcmp.ne.f32.partialorder %v2323_v41, 0.0 }
  0xa5   :  { %v1311_v41 = vsel %vm927_vm13, %v3188_v40, 0.0  ;;  %v1266_v61 = vsel %vm882_vm2, %v3192_v45, 0.0 }
  0xa6   :  { %v2327_v42 = vpop.permute.xlu1 %671  ;;  %v1525_v48 = vsel %vm66_vm0, %v1311_v41, 0.0  ;;  %v1419_v33 = vsel %vm66_vm0, %v1266_v61, 0.0 }
  0xa7   :  { %v2329_v43 = vpop.permute.xlu0 %667  ;;  %vm944_vm3 = vcmp.ne.f32.partialorder %v2327_v42, 0.0  ;;  %v3190_v42 = vunpack.c.h.bf16 %v2346_v51 }
  0xa8   :  { %766 = vbcast.lane.b32.xlu0 %v2230_v19, 320  ;;  %829 = vbcast.lane.b32.xlu1 %v2238_v21, 312  ;;  %vm943_vm4 = vcmp.ne.f32.partialorder %v2329_v43, 0.0  ;;  %v3191_v43 = vunpack.c.l.bf16 %v2358_v59  ;;  %v1328_v38 = vsel %vm944_vm3, %v3193_v47, 0.0 }
  0xa9   :  { %v1312_v32 = vsel %vm928_vm15, %v3190_v42, 0.0  ;;  %v1327_v51 = vsel %vm943_vm4, %v3194_v35, 0.0  ;;  %v1455_v42 = vadd.f32 %v1454_v36, %v1453_v23  ;;  %v1563_v57 = vsel %vm66_vm0, %v1328_v38, 0.0 }
  0xaa   :  { %v2350_v53 = vpop.permute.xlu1 %608  ;;  %v1297_v56 = vsel %vm913_vm1, %v3191_v43, 0.0  ;;  %v1526_v58 = vsel %vm66_vm0, %v1312_v32, 0.0  ;;  %v1562_v4 = vsel %vm66_vm0, %v1327_v51, 0.0  ;;  %v1383_v32 = vadd.f32 %v1382_v49, %v1381_v24 }
  0xab   :  { %v2352_v54 = vpop.permute.xlu0 %478  ;;  %vm929_vm5 = vcmp.ne.f32.partialorder %v2350_v53, 0.0  ;;  %v1491_v40 = vsel %vm66_vm0, %v1297_v56, 0.0  ;;  %v1527_v53 = vadd.f32 %v1526_v58, %v1525_v48  ;;  %v1420_v43 = vadd.f32 %v1419_v33, %v1418_v63 }
  0xac   :  { %443 = vbcast.lane.b32.xlu0 %v2200_v8, 344  ;;  %636 = vbcast.lane.b32.xlu1 %v2218_v15, 328  ;;  %vm898_vm6 = vcmp.ne.f32.partialorder %v2352_v54, 0.0  ;;  %v1313_v54 = vsel %vm929_vm5, %v3195_v60, 0.0  ;;  %v1492_v23 = vadd.f32 %v1491_v40, %v1490_v22  ;;  %v1564_v52 = vadd.f32 %v1563_v57, %v1562_v4 }
  0xad   :  { %v1282_v39 = vsel %vm898_vm6, %v3196_v37, 0.0  ;;  %v1528_v56 = vsel %vm66_vm0, %v1313_v54, 0.0  ;;  %v3199_v36 = vunpack.c.l.bf16 %v2378_v12  ;;  %v3201_v22 = vunpack.c.l.bf16 %v2380_v14 }
  0xae   :  { %v2386_v28 = vpop.permute.xlu1 %738  ;;  %v1456_v45 = vsel %vm66_vm0, %v1282_v39, 0.0  ;;  %v1529_v35 = vadd.f32 %v1528_v56, %v1527_v53  ;;  %v3203_v49 = vunpack.c.h.bf16 %v2390_v31  ;;  %v3204_v40 = vunpack.c.l.bf16 %v2390_v31 }
  0xaf   :  { %v2388_v29 = vpop.permute.xlu0 %734  ;;  %vm960_vm7 = vcmp.ne.f32.partialorder %v2386_v28, 0.0  ;;  %v3205_v33 = vunpack.c.h.bf16 %v2378_v12 }
  0xb0   :  { %703 = vbcast.lane.b32.xlu0 %v2224_v17, 328  ;;  %376 = vbcast.lane.b32.xlu1 %v2198_v7, 344  ;;  %vm959_vm10 = vcmp.ne.f32.partialorder %v2388_v29, 0.0  ;;  %v3200_v29 = vunpack.c.l.bf16 %v2370_v2 }
  0xb2   :  { %v2418_v50 = vpop.permute.xlu1 %415  ;;  %v1343_v51 = vsel %vm959_vm10, %v3200_v29, 0.0  ;;  %v3210_v29 = vunpack.c.l.bf16 %v2416_v5 }
  0xb3   :  { %v2420_v9 = vpop.permute.xlu0 %348  ;;  %vm883_vm8 = vcmp.ne.f32.partialorder %v2418_v50, 0.0  ;;  %v3197_v50 = vunpack.c.h.bf16 %v2370_v2 }
  0xb4   :  { %510 = vbcast.lane.b32.xlu0 %v2208_v11, 344  ;;  %573 = vbcast.lane.b32.xlu1 %v2212_v13, 336  ;;  %vm867_vm9 = vcmp.ne.f32.partialorder %v2420_v9, 0.0  ;;  %v3198_v9 = vunpack.c.l.bf16 %v2376_v10 }
  0xb5   :  { %v1344_v28 = vsel %vm960_vm7, %v3197_v50, 0.0  ;;  %v1251_v63 = vsel %vm867_vm9, %v3199_v36, 0.0  ;;  %v3209_v50 = vunpack.c.h.bf16 %v2376_v10 }
  0xb6   :  { %v2453_v6 = vpop.permute.xlu1 %675  ;;  %v1267_v61 = vsel %vm883_vm8, %v3198_v9, 0.0  ;;  %v2597_v24 = vsel %vm66_vm0, %v1344_v28, 0.0 }
  0xb7   :  { %v2455_v16 = vpop.permute.xlu0 %545  ;;  %vm945_vm11 = vcmp.ne.f32.partialorder %v2453_v6, 0.0  ;;  %v2588_v6 = vadd.f32 %v1456_v45, %v1455_v42 }
  0xb8   :  { %770 = vbcast.lane.b32.xlu0 %v2230_v19, 328  ;;  %833 = vbcast.lane.b32.xlu1 %v2238_v21, 320  ;;  %vm914_vm12 = vcmp.ne.f32.partialorder %v2455_v16, 0.0  ;;  %v1329_v48 = vsel %vm945_vm11, %v3201_v22, 0.0  ;;  %v2617_v16 = vsel %vm66_vm0, %v1343_v51, 0.0 }
  0xb9   :  { %v1565_v57 = vsel %vm66_vm0, %v1329_v48, 0.0 }
  0xba   :  { %v2493_v62 = vpop.permute.xlu1 %805  ;;  %v1566_v56 = vadd.f32 %v1565_v57, %v1564_v52 }
  0xbb   :  { %v2495_v0 = vpop.permute.xlu0 %801  ;;  %vm976_vm13 = vcmp.ne.f32.partialorder %v2493_v62, 0.0  ;;  %v1421_v62 = vsel %vm66_vm0, %v1267_v61, 0.0 }
  0xbc   :  { %447 = vbcast.lane.b32.xlu0 %v2200_v8, 352  ;;  %640 = vbcast.lane.b32.xlu1 %v2218_v15, 336  ;;  %vm975_vm14 = vcmp.ne.f32.partialorder %v2495_v0, 0.0  ;;  %v1384_v0 = vsel %vm66_vm0, %v1251_v63, 0.0  ;;  %v1360_v58 = vsel %vm976_vm13, %v3203_v49, 0.0  ;;  %v1422_v31 = vadd.f32 %v1421_v62, %v1420_v43 }
  0xbd   :  { %v1385_v37 = vadd.f32 %v1384_v0, %v1383_v32  ;;  %v1637_v12 = vsel %vm66_vm0, %v1360_v58, 0.0  ;;  %v3208_v32 = vunpack.c.l.bf16 %v2401_v27  ;;  %v3212_v62 = vunpack.c.h.bf16 %v2380_v14 }
  0xbe   :  { %v2516_v26 = vpop.permute.xlu1 %612 }
  0xbf   :  { %v2518_v46 = vpop.permute.xlu0 %482  ;;  %vm930_vm1 = vcmp.ne.f32.partialorder %v2516_v26, 0.0  ;;  %v1359_v26 = vsel %vm975_vm14, %v3204_v40, 0.0  ;;  %v3213_v40 = vunpack.c.h.bf16 %v2401_v27 }
  0xc0   :  { %707 = vbcast.lane.b32.xlu0 %v2224_v17, 336  ;;  %380 = vbcast.lane.b32.xlu1 %v2198_v7, 352  ;;  %vm899_vm2 = vcmp.ne.f32.partialorder %v2518_v46, 0.0  ;;  %v1636_v53 = vsel %vm66_vm0, %v1359_v26, 0.0 }
  0xc1   :  { %v1638_v46 = vadd.f32 %v1637_v12, %v1636_v53 }
  0xc2   :  { %v353_v20 = vpop.permute.xlu1 %352 }
  0xc3   :  { %v2546_v34 = vpop.permute.xlu0 %742  ;;  %vm868_vm15 = vcmp.ne.f32.partialorder %v353_v20, 0.0  ;;  %v3202_v20 = vunpack.c.h.bf16 %v2358_v59  ;;  %v3206_v59 = vunpack.c.h.bf16 %v2367_v1  ;;  %v3207_v1 = vunpack.c.l.bf16 %v2397_v18 }
  0xc4   :  { %514 = vbcast.lane.b32.xlu0 %v2208_v11, 352  ;;  %577 = vbcast.lane.b32.xlu1 %v2212_v13, 344  ;;  %v1252_v60 = vsel %vm868_vm15, %v3205_v33, 0.0  ;;  %vm961_vm8 = vcmp.ne.f32.partialorder %v2546_v34, 0.0  ;;  %v3214_v33 = vunpack.c.l.bf16 %v2426_v55 }
  0xc5   :  { %v1298_v2 = vsel %vm914_vm12, %v3202_v20, 0.0  ;;  %v1314_v4 = vsel %vm930_vm1, %v3206_v59, 0.0  ;;  %v3215_v59 = vld [vmem:[#allocation6_spill] sm:$0xff] }
  0xc6   :  { %v550_v41 = vpop.permute.xlu1 %549  ;;  %v1493_v39 = vsel %vm66_vm0, %v1298_v2, 0.0  ;;  %v1530_v45 = vsel %vm66_vm0, %v1314_v4, 0.0  ;;  %v3216_v4 = vunpack.c.l.bf16 %v3215_v59 }
  0xc7   :  { %v420_v44 = vpop.permute.xlu0 %419  ;;  %vm915_vm3 = vcmp.ne.f32.partialorder %v550_v41, 0.0  ;;  %v1283_v41 = vsel %vm899_vm2, %v3207_v1, 0.0  ;;  %v1494_v36 = vadd.f32 %v1493_v39, %v1492_v23  ;;  %v1531_v22 = vadd.f32 %v1530_v45, %v1529_v35 }
  0xc8   :  { %774 = vbcast.lane.b32.xlu0 %v2230_v19, 336  ;;  %837 = vbcast.lane.b32.xlu1 %v2238_v21, 328  ;;  %vm884_vm4 = vcmp.ne.f32.partialorder %v420_v44, 0.0  ;;  %v1386_v44 = vsel %vm66_vm0, %v1252_v60, 0.0  ;;  %v1299_v43 = vsel %vm915_vm3, %v3208_v32, 0.0  ;;  %v1458_v63 = vsel %vm66_vm0, %v1283_v41, 0.0 }
  0xc9   :  { %v1268_v28 = vsel %vm884_vm4, %v3209_v50, 0.0  ;;  %v1387_v52 = vadd.f32 %v1386_v44, %v1385_v37  ;;  %v1495_v10 = vsel %vm66_vm0, %v1299_v43, 0.0  ;;  %v3218_v41 = vld [vmem:[#allocation5_spill] sm:$0xff] }
  0xca   :  { %v810_v47 = vpop.permute.xlu1 %809  ;;  %v1423_v48 = vsel %vm66_vm0, %v1268_v28, 0.0  ;;  %v1496_v35 = vadd.f32 %v1495_v10, %v1494_v36  ;;  %v3219_v44 = vunpack.c.l.bf16 %v3218_v41  ;;  %v3221_v28 = vld [vmem:[#allocation7_spill] sm:$0xff] }
  0xcb   :  { %v680_v38 = vpop.permute.xlu0 %679  ;;  %vm977_vm5 = vcmp.ne.f32.partialorder %v810_v47, 0.0  ;;  %v3211_v47 = vunpack.c.l.bf16 %v2408_v3  ;;  %v1424_v58 = vadd.f32 %v1423_v48, %v1422_v31  ;;  %v3217_v31 = vunpack.c.h.bf16 %v2397_v18 }
  0xcc   :  { %451 = vbcast.lane.b32.xlu0 %v2200_v8, 360  ;;  %644 = vbcast.lane.b32.xlu1 %v2218_v15, 344  ;;  %vm946_vm6 = vcmp.ne.f32.partialorder %v680_v38, 0.0  ;;  %v1345_v45 = vsel %vm961_vm8, %v3219_v44, 0.0  ;;  %v3220_v18 = vunpack.c.h.bf16 %v2408_v3 }
  0xcd   :  { %v1361_v38 = vsel %vm977_vm5, %v3211_v47, 0.0  ;;  %v1330_v0 = vsel %vm946_vm6, %v3212_v62, 0.0  ;;  %v1601_v47 = vadd.f32 %v2597_v24, %v2617_v16 }
  0xce   :  { %v617_v54 = vpop.permute.xlu1 %616  ;;  %v1639_v14 = vsel %vm66_vm0, %v1361_v38, 0.0  ;;  %v1567_v57 = vsel %vm66_vm0, %v1330_v0, 0.0  ;;  %v1602_v38 = vsel %vm66_vm0, %v1345_v45, 0.0 }
  0xcf   :  { %v487_v42 = vpop.permute.xlu0 %486  ;;  %vm931_vm9 = vcmp.ne.f32.partialorder %v617_v54, 0.0  ;;  %v1640_v32 = vadd.f32 %v1639_v14, %v1638_v46  ;;  %v1568_v43 = vadd.f32 %v1567_v57, %v1566_v56  ;;  %v3223_v56 = vunpack.c.h.bf16 %v3218_v41 }
  0xd0   :  { %711 = vbcast.lane.b32.xlu0 %v2224_v17, 344  ;;  %384 = vbcast.lane.b32.xlu1 %v2198_v7, 360  ;;  %vm900_vm10 = vcmp.ne.f32.partialorder %v487_v42, 0.0  ;;  %v1315_v37 = vsel %vm931_vm9, %v3216_v4, 0.0 }
  0xd1   :  { %v1284_v27 = vsel %vm900_vm10, %v3217_v31, 0.0 }
  0xd2   :  { %v357_v9 = vpop.permute.xlu1 %356  ;;  %v1460_v34 = vsel %vm66_vm0, %v1284_v27, 0.0 }
  0xd3   :  { %v747_v61 = vpop.permute.xlu0 %746  ;;  %vm869_vm7 = vcmp.ne.f32.partialorder %v357_v9, 0.0  ;;  %v3222_v9 = vunpack.c.l.bf16 %v3221_v28 }
  0xd4   :  { %518 = vbcast.lane.b32.xlu0 %v2208_v11, 360  ;;  %v1253_v51 = vsel %vm869_vm7, %v3210_v29, 0.0  ;;  %581 = vbcast.lane.b32.xlu1 %v2212_v13, 352  ;;  %vm962_vm13 = vcmp.ne.f32.partialorder %v747_v61, 0.0 }
  0xd5   :  { %v1388_v23 = vsel %vm66_vm0, %v1253_v51, 0.0  ;;  %v1459_v51 = vadd.f32 %v1458_v63, %v2588_v6  ;;  %v1346_v46 = vsel %vm962_vm13, %v3223_v56, 0.0  ;;  %v3224_v63 = vunpack.c.h.bf16 %v3215_v59  ;;  %v2730_v56 = vld [vmem:[#allocation4 + $0x20] sm:$0xff]  }
  0xd6   :  { %v2646_v20 = vadd.f32 %v1388_v23, %v1387_v52  ;;  %v554_v2 = vpop.permute.xlu1 %553  ;;  %v1532_v52 = vsel %vm66_vm0, %v1315_v37, 0.0  ;;  %v1604_v24 = vsel %vm66_vm0, %v1346_v46, 0.0  ;;  %v3227_v59 = vunpack.c.l.bf16 %v2473_v30 }
  0xd7   :  { %v424_v49 = vpop.permute.xlu0 %423  ;;  %vm916_vm11 = vcmp.ne.f32.partialorder %v554_v2, 0.0  ;;  %v1533_v62 = vadd.f32 %v1532_v52, %v1531_v22  ;;  %v1461_v6 = vadd.f32 %v1460_v34, %v1459_v51  ;;  %v3225_v2 = vld [vmem:[#allocation8_spill] sm:$0xff]  ;;  %v1859_v37 = vunpack.c.h.bf16 %v2426_v55 }
  0xd8   :  { %vm885_vm12 = vcmp.ne.f32.partialorder %v424_v49, 0.0  ;;  %778 = vbcast.lane.b32.xlu0 %v2230_v19, 344  ;;  %v1300_v26 = vsel %vm916_vm11, %v3213_v40, 0.0  ;;  %841 = vbcast.lane.b32.xlu1 %v2238_v21, 336  ;;  %v3226_v49 = vunpack.c.l.bf16 %v3225_v2 }
  0xd9   :  { %v1269_v60 = vsel %vm885_vm12, %v3214_v33, 0.0  ;;  %v1497_v54 = vsel %vm66_vm0, %v1300_v26, 0.0  ;;  %v1603_v26 = vadd.f32 %v1602_v38, %v1601_v47  ;;  %v1830_v38 = vunpack.c.l.bf16 %v2730_v56 }
  0xda   :  { %v1425_v42 = vsel %vm66_vm0, %v1269_v60, 0.0  ;;  %v2662_v39 = vadd.f32 %v1497_v54, %v1496_v35  ;;  %v814_v53 = vpop.permute.xlu1 %813 }
  0xdb   :  { %v2664_v12 = vadd.f32 %v1425_v42, %v1424_v58  ;;  %v684_v1 = vpop.permute.xlu0 %683  ;;  %vm978_vm14 = vcmp.ne.f32.partialorder %v814_v53, 0.0  ;;  %v2696_v58 = vld [vmem:[#allocation4 + $0xd8] sm:$0xff]   ;;  %v1605_v54 = vadd.f32 %v1604_v24, %v1603_v26  ;;  %v2711_v53 = vld [vmem:[#allocation4 + $0x1d0] sm:$0xff]  }
  0xdc   :  { %vm947_vm15 = vcmp.ne.f32.partialorder %v684_v1, 0.0  ;;  %455 = vbcast.lane.b32.xlu0 %v2200_v8, 368  ;;  %v1362_v50 = vsel %vm978_vm14, %v3220_v18, 0.0  ;;  %648 = vbcast.lane.b32.xlu1 %v2218_v15, 352  ;;  %v1922_v57 = vunpack.c.l.bf16 %v2696_v58  ;;  %v2046_v55 = vunpack.c.l.bf16 %v2711_v53  ;;  %v2748_v26 = vld [vmem:[#allocation4 + $0x158] sm:$0xff]  }
  0xdd   :  { %v1331_v36 = vsel %vm947_vm15, %v3222_v9, 0.0  ;;  %v1641_v61 = vsel %vm66_vm0, %v1362_v50, 0.0 }
  0xde   :  { %v1569_v29 = vsel %vm66_vm0, %v1331_v36, 0.0  ;;  %v2683_v3 = vadd.f32 %v1641_v61, %v1640_v32  ;;  %v621_v48 = vpop.permute.xlu1 %620  ;;  %v1983_v32 = vunpack.c.h.bf16 %v3221_v28 }
  0xdf   :  { %v2685_v10 = vadd.f32 %v1569_v29, %v1568_v43  ;;  %v491_v23 = vpop.permute.xlu0 %490  ;;  %vm932_vm1 = vcmp.ne.f32.partialorder %v621_v48, 0.0  ;;  %v1891_v29 = vunpack.c.h.bf16 %v3225_v2 }
  0xe0   :  { %vm901_vm2 = vcmp.ne.f32.partialorder %v491_v23, 0.0  ;;  %715 = vbcast.lane.b32.xlu0 %v2224_v17, 352  ;;  %v1316_v0 = vsel %vm932_vm1, %v3224_v63, 0.0  ;;  %388 = vbcast.lane.b32.xlu1 %v2198_v7, 368  ;;  %v2740_v63 = vld [vmem:[#allocation4 + $0x60] sm:$0xff]  }
  0xe1   :  { %v1285_v35 = vsel %vm901_vm2, %v3226_v49, 0.0  ;;  %v1534_v16 = vsel %vm66_vm0, %v1316_v0, 0.0  ;;  %v1862_v24 = vunpack.c.l.bf16 %v2740_v63 }
  0xe2   :  { %v1462_v40 = vsel %vm66_vm0, %v1285_v35, 0.0  ;;  %v1535_v33 = vadd.f32 %v1534_v16, %v1533_v62  ;;  %v361_v60 = vpop.permute.xlu1 %360  ;;  %v2015_v62 = vunpack.c.h.bf16 %v2473_v30  ;;  %v1923_v30 = vunpack.c.h.bf16 %v2696_v58 }
  0xe3   :  { %v1463_v22 = vadd.f32 %v1462_v40, %v1461_v6  ;;  %v751_v14 = vpop.permute.xlu0 %750  ;;  %vm870_vm3 = vcmp.ne.f32.partialorder %v361_v60, 0.0  ;;  %v2047_v58 = vunpack.c.h.bf16 %v2711_v53 }
  0xe4   :  { %vm963_vm4 = vcmp.ne.f32.partialorder %v751_v14, 0.0  ;;  %522 = vbcast.lane.b32.xlu0 %v2208_v11, 368  ;;  %v1254_v42 = vsel %vm870_vm3, %v1827_v25, 0.0  ;;  %585 = vbcast.lane.b32.xlu1 %v2212_v13, 360 }
  0xe5   :  { %v1347_v4 = vsel %vm963_vm4, %v3227_v59, 0.0  ;;  %v1390_v31 = vsel %vm66_vm0, %v1254_v42, 0.0 }
  0xe6   :  { %v1606_v27 = vsel %vm66_vm0, %v1347_v4, 0.0  ;;  %v1391_v1 = vadd.f32 %v1390_v31, %v2646_v20  ;;  %v558_v44 = vpop.permute.xlu1 %557  ;;  %v2720_v20 = vld [vmem:[#allocation4 + $0x118] sm:$0xff]   ;;  %v2756_v4 = vld [vmem:[#allocation4 + $0xa0] sm:$0xff]  }
  0xe7   :  { %v1607_v41 = vadd.f32 %v1606_v27, %v1605_v54  ;;  %v428_v45 = vpop.permute.xlu0 %427  ;;  %vm917_vm5 = vcmp.ne.f32.partialorder %v558_v44, 0.0  ;;  %v1954_v28 = vunpack.c.l.bf16 %v2720_v20  ;;  %v1986_v54 = vunpack.c.l.bf16 %v2748_v26 }
  0xe8   :  { %vm886_vm6 = vcmp.ne.f32.partialorder %v428_v45, 0.0  ;;  %782 = vbcast.lane.b32.xlu0 %v2230_v19, 352  ;;  %v1301_v5 = vsel %vm917_vm5, %v1922_v57, 0.0  ;;  %845 = vbcast.lane.b32.xlu1 %v2238_v21, 344  ;;  %v1955_v53 = vunpack.c.h.bf16 %v2720_v20  ;;  %v1894_v45 = vunpack.c.l.bf16 %v2756_v4 }
  0xe9   :  { %v1270_v25 = vsel %vm886_vm6, %v1859_v37, 0.0  ;;  %v1499_v43 = vsel %vm66_vm0, %v1301_v5, 0.0  ;;  %v1831_v20 = vunpack.c.h.bf16 %v2730_v56 }
  0xea   :  { %v1427_v18 = vsel %vm66_vm0, %v1270_v25, 0.0  ;;  %v1500_v50 = vadd.f32 %v1499_v43, %v2662_v39  ;;  %v818_v36 = vpop.permute.xlu1 %817 }
  0xeb   :  { %v1428_v9 = vadd.f32 %v1427_v18, %v2664_v12  ;;  %v688_v52 = vpop.permute.xlu0 %687  ;;  %vm979_vm7 = vcmp.ne.f32.partialorder %v818_v36, 0.0 }
  0xec   :  { %vm948_vm8 = vcmp.ne.f32.partialorder %v688_v52, 0.0  ;;  %459 = vbcast.lane.b32.xlu0 %v2200_v8, 376  ;;  %v1363_v34 = vsel %vm979_vm7, %v2046_v55, 0.0  ;;  %652 = vbcast.lane.b32.xlu1 %v2218_v15, 360  ;;  %v2764_v55 = vld [vmem:[#allocation4 + $0x198] sm:$0xff]  }
  0xed   :  { %v1332_v61 = vsel %vm948_vm8, %v1983_v32, 0.0  ;;  %v1643_v51 = vsel %vm66_vm0, %v1363_v34, 0.0  ;;  %v2018_v52 = vunpack.c.l.bf16 %v2764_v55 }
  0xee   :  { %v1571_v39 = vsel %vm66_vm0, %v1332_v61, 0.0  ;;  %v1644_v12 = vadd.f32 %v1643_v51, %v2683_v3  ;;  %v625_v48 = vpop.permute.xlu1 %624 }
  0xef   :  { %v1572_v46 = vadd.f32 %v1571_v39, %v2685_v10  ;;  %v495_v8 = vpop.permute.xlu0 %494  ;;  %vm933_vm9 = vcmp.ne.f32.partialorder %v625_v48, 0.0 }
  0xf0   :  { %vm902_vm10 = vcmp.ne.f32.partialorder %v495_v8, 0.0  ;;  %719 = vbcast.lane.b32.xlu0 %v2224_v17, 360  ;;  %v1317_v23 = vsel %vm933_vm9, %v1954_v28, 0.0  ;;  %392 = vbcast.lane.b32.xlu1 %v2198_v7, 376  ;;  %v2772_v28 = vld [vmem:[#allocation4 + $0xe0] sm:$0xff]  }
  0xf1   :  { %v1286_v47 = vsel %vm902_vm10, %v1891_v29, 0.0  ;;  %v1536_v6 = vsel %vm66_vm0, %v1317_v23, 0.0  ;;  %v1926_v56 = vunpack.c.l.bf16 %v2772_v28  ;;  %v2780_v23 = vld [vmem:[#allocation4 + $0x1d8] sm:$0xff]  }
  0xf2   :  { %v1464_v3 = vsel %vm66_vm0, %v1286_v47, 0.0  ;;  %v1537_v10 = vadd.f32 %v1536_v6, %v1535_v33  ;;  %v365_v2 = vpop.permute.xlu1 %364 }
  0xf3   :  { %v1465_v0 = vadd.f32 %v1464_v3, %v1463_v22  ;;  %v755_v49 = vpop.permute.xlu0 %754  ;;  %vm871_vm11 = vcmp.ne.f32.partialorder %v365_v2, 0.0  ;;  %v1707_v3 = vld [vmem:[#allocation3] sm:$0xff] }
  0xf4   :  { %vm964_vm12 = vcmp.ne.f32.partialorder %v755_v49, 0.0  ;;  %526 = vbcast.lane.b32.xlu0 %v2208_v11, 376  ;;  %v1255_v35 = vsel %vm871_vm11, %v1830_v38, 0.0  ;;  %589 = vbcast.lane.b32.xlu1 %v2212_v13, 368 }
  0xf5   :  { %v1348_v7 = vsel %vm964_vm12, %v2015_v62, 0.0  ;;  %v1392_v16 = vsel %vm66_vm0, %v1255_v35, 0.0  ;;  %v1708_v35 = vmax.f32 %v1707_v3, 1e-09 }
  0xf6   :  { %v1608_v40 = vsel %vm66_vm0, %v1348_v7, 0.0  ;;  %v1393_v33 = vadd.f32 %v1392_v16, %v1391_v1  ;;  %v562_v60 = vpop.permute.xlu1 %561  ;;  %v2788_v7 = vld [vmem:[#allocation4 + $0x120] sm:$0xff]  }
  0xf7   :  { %v1609_v22 = vadd.f32 %v1608_v40, %v1607_v41  ;;  %v432_v14 = vpop.permute.xlu0 %431  ;;  %vm918_vm13 = vcmp.ne.f32.partialorder %v562_v60, 0.0 }
  0xf8   :  { %vm887_vm14 = vcmp.ne.f32.partialorder %v432_v14, 0.0  ;;  %786 = vbcast.lane.b32.xlu0 %v2230_v19, 360  ;;  %v1302_v11 = vsel %vm918_vm13, %v1923_v30, 0.0  ;;  %849 = vbcast.lane.b32.xlu1 %v2238_v21, 352 }
  0xf9   :  { %v1271_v57 = vsel %vm887_vm14, %v1862_v24, 0.0  ;;  %v1501_v42 = vsel %vm66_vm0, %v1302_v11, 0.0  ;;  %v2795_v11 = vld [vmem:[#allocation4 + $0x28] sm:$0xff]  }
  0xfa   :  { %v1429_v59 = vsel %vm66_vm0, %v1271_v57, 0.0  ;;  %v1502_v37 = vadd.f32 %v1501_v42, %v1500_v50  ;;  %v822_v27 = vpop.permute.xlu1 %821 }
  0xfb   :  { %v1430_v31 = vadd.f32 %v1429_v59, %v1428_v9  ;;  %v692_v1 = vpop.permute.xlu0 %691  ;;  %vm980_vm15 = vcmp.ne.f32.partialorder %v822_v27, 0.0 }
  0xfc   :  { %vm949_vm1 = vcmp.ne.f32.partialorder %v692_v1, 0.0  ;;  %723 = vbcast.lane.b32.xlu0 %v2224_v17, 368  ;;  %v1364_v41 = vsel %vm980_vm15, %v2047_v58, 0.0  ;;  %656 = vbcast.lane.b32.xlu1 %v2218_v15, 368 }
  0xfd   :  { %v1333_v44 = vsel %vm949_vm1, %v1986_v54, 0.0  ;;  %v1645_v5 = vsel %vm66_vm0, %v1364_v41, 0.0  ;;  %v2806_v41 = vld [vmem:[#allocation4 + $0x68] sm:$0xff]   ;;  %vm2163_vm1 = vmmov 0  }
  0xfe   :  { %v1573_v25 = vsel %vm66_vm0, %v1333_v44, 0.0  ;;  %v1646_v32 = vadd.f32 %v1645_v5, %v1644_v12  ;;  %v629_v18 = vpop.permute.xlu1 %628 }
  0xff   :  { %v1574_v43 = vadd.f32 %v1573_v25, %v1572_v46  ;;  %v499_v50 = vpop.permute.xlu0 %498  ;;  %vm934_vm2 = vcmp.ne.f32.partialorder %v629_v18, 0.0  ;;  %v1863_v46 = vunpack.c.h.bf16 %v2740_v63  ;;  %v2050_v63 = vunpack.c.l.bf16 %v2780_v23 }
 0x100   :  { %vm903_vm3 = vcmp.ne.f32.partialorder %v499_v50, 0.0  ;;  %660 = vbcast.lane.b32.xlu0 %v2218_v15, 376  ;;  %v1318_v9 = vsel %vm934_vm2, %v1955_v53, 0.0  ;;  %593 = vbcast.lane.b32.xlu1 %v2212_v13, 376  ;;  %v2816_v50 = vld [vmem:[#allocation4 + $0x160] sm:$0xff]  }
 0x101   :  { %v1287_v36 = vsel %vm903_vm3, %v1894_v45, 0.0  ;;  %v1538_v34 = vsel %vm66_vm0, %v1318_v9, 0.0 }
 0x102   :  { %v1466_v61 = vsel %vm66_vm0, %v1287_v36, 0.0  ;;  %v1539_v29 = vadd.f32 %v1538_v34, %v1537_v10  ;;  %v369_v39 = vpop.permute.xlu1 %368  ;;  %v2051_v34 = vunpack.c.h.bf16 %v2780_v23 }
 0x103   :  { %v1467_v51 = vadd.f32 %v1466_v61, %v1465_v0  ;;  %v759_v12 = vpop.permute.xlu0 %758  ;;  %vm872_vm4 = vcmp.ne.f32.partialorder %v369_v39, 0.0  ;;  %v1987_v0 = vunpack.c.h.bf16 %v2748_v26  ;;  %v1958_v26 = vunpack.c.l.bf16 %v2788_v7  ;;  %v1718_v39 = vld [vmem:[%s3162_s2 + $0x8] sm:$0xff] }
 0x104   :  { %vm965_vm5 = vcmp.ne.f32.partialorder %v759_v12, 0.0  ;;  %727 = vbcast.lane.b32.xlu0 %v2224_v17, 376  ;;  %v1256_v15 = vsel %vm872_vm4, %v1831_v20, 0.0  ;;  %853 = vbcast.lane.b32.xlu1 %v2238_v21, 360  ;;  %v1719_v12 = vld [vmem:[%s3162_s2 + $0x10] sm:$0xff] }
 0x105   :  { %v1349_v13 = vsel %vm965_vm5, %v2018_v52, 0.0  ;;  %v1394_v48 = vsel %vm66_vm0, %v1256_v15, 0.0 }
 0x106   :  { %v1610_v8 = vsel %vm66_vm0, %v1349_v13, 0.0  ;;  %v1395_v47 = vadd.f32 %v1394_v48, %v1393_v33  ;;  %v566_v62 = vpop.permute.xlu1 %565 }
 0x107   :  { %v1611_v38 = vadd.f32 %v1610_v8, %v1609_v22  ;;  %v436_v6 = vpop.permute.xlu0 %435  ;;  %vm919_vm6 = vcmp.ne.f32.partialorder %v566_v62, 0.0  ;;  %v1895_v22 = vunpack.c.h.bf16 %v2756_v4  ;;  %v1834_v4 = vunpack.c.l.bf16 %v2795_v11  ;;  %v1720_v8 = vld [vmem:[%s3162_s2 + $0x18] sm:$0xff] }
 0x108   :  { %vm888_vm7 = vcmp.ne.f32.partialorder %v436_v6, 0.0  ;;  %794 = vbcast.lane.b32.xlu0 %v2230_v19, 376  ;;  %v1303_v17 = vsel %vm919_vm6, %v1926_v56, 0.0  ;;  %790 = vbcast.lane.b32.xlu1 %v2230_v19, 368  ;;  %v2835_v56 = vld [vmem:[#allocation4 + $0xa8] sm:$0xff]   ;;  %v3228_v6 = vmov 0.0   ;;  %v2151_v3 = vpack.c.bf16 %v1720_v8, %v1719_v12 }
 0x109   :  { %v1272_v10 = vsel %vm888_vm7, %v1863_v46, 0.0  ;;  %v1503_v2 = vsel %vm66_vm0, %v1303_v17, 0.0  ;;  %v2162_v46 = vmov 0.0|0.0   ;;  %2144 = vmatprep.mubr.msk.f32.mxu0 %vm2163_vm1, %v3228_v6 }
 0x10a   :  { %v1431_v49 = vsel %vm66_vm0, %v1272_v10, 0.0  ;;  %v1504_v30 = vadd.f32 %v1503_v2, %v1502_v37  ;;  %v826_v16 = vpop.permute.xlu1 %825  ;;  %2147 = vmatprep.subr.bf16.mxu0 %v2162_v46 }
 0x10b   :  { %v1432_v24 = vadd.f32 %v1431_v49, %v1430_v31  ;;  %v696_v40 = vpop.permute.xlu0 %695  ;;  %vm981_vm8 = vcmp.ne.f32.partialorder %v826_v16, 0.0  ;;  %v2019_v31 = vunpack.c.h.bf16 %v2764_v55  ;;  %v1866_v55 = vunpack.c.l.bf16 %v2806_v41 }
 0x10c   :  { %vm950_vm9 = vcmp.ne.f32.partialorder %v696_v40, 0.0  ;;  %1712 = vperm.xlu0 %2157, %v1708_v35   ;;  %v1365_v33 = vsel %vm981_vm8, %v2050_v63, 0.0  ;;  %857 = vbcast.lane.b32.xlu1 %v2238_v21, 368  ;;  %v1959_v63 = vunpack.c.h.bf16 %v2788_v7  ;;  %v2845_v35 = vld [vmem:[#allocation4 + $0x1a0] sm:$0xff]  }
 0x10d   :  { %v1334_v19 = vsel %vm950_vm9, %v1987_v0, 0.0  ;;  %v1647_v60 = vsel %vm66_vm0, %v1365_v33, 0.0  ;;  %v1898_v0 = vunpack.c.l.bf16 %v2835_v56 }
 0x10e   :  { %v1575_v14 = vsel %vm66_vm0, %v1334_v19, 0.0  ;;  %v2797_v57 = vadd.f32 %v1647_v60, %v1646_v32  ;;  %v633_v54 = vpop.permute.xlu1 %632  ;;  %v1927_v32 = vunpack.c.h.bf16 %v2772_v28  ;;  %v1835_v19 = vunpack.c.h.bf16 %v2795_v11 }
 0x10f   :  { %v2799_v58 = vadd.f32 %v1575_v14, %v1574_v43  ;;  %v503_v42 = vpop.permute.xlu0 %502  ;;  %vm935_vm10 = vcmp.ne.f32.partialorder %v633_v54, 0.0  ;;  %v2853_v14 = vld [vmem:[#allocation4 + $0xe8] sm:$0xff]  }
 0x110   :  { %vm904_vm11 = vcmp.ne.f32.partialorder %v503_v42, 0.0  ;;  %v1319_v59 = vsel %vm935_vm10, %v1958_v26, 0.0  ;;  %861 = vbcast.lane.b32.xlu1 %v2238_v21, 376  ;;  %v2022_v26 = vunpack.c.l.bf16 %v2845_v35  ;;  %v1930_v11 = vunpack.c.l.bf16 %v2853_v14 }
 0x111   :  { %v1288_v37 = vsel %vm904_vm11, %v1895_v22, 0.0  ;;  %v1540_v27 = vsel %vm66_vm0, %v1319_v59, 0.0 }
 0x112   :  { %v1468_v1 = vsel %vm66_vm0, %v1288_v37, 0.0  ;;  %v2808_v44 = vadd.f32 %v1540_v27, %v1539_v29  ;;  %v373_v45 = vpop.permute.xlu1 %372  ;;  %v1990_v29 = vunpack.c.l.bf16 %v2816_v50 }
 0x113   :  { %v2810_v53 = vadd.f32 %v1468_v1, %v1467_v51  ;;  %v763_v5 = vpop.permute.xlu0 %762  ;;  %vm873_vm12 = vcmp.ne.f32.partialorder %v373_v45, 0.0  ;;  %v1717_v51 = vld [vmem:[%s3162_s2] sm:$0xff]  ;;  %v2861_v1 = vld [vmem:[#allocation4 + $0x1e0] sm:$0xff]  }
 0x114   :  { %vm966_vm13 = vcmp.ne.f32.partialorder %v763_v5, 0.0  ;;  %v1257_v25 = vsel %vm873_vm12, %v1834_v4, 0.0  ;;  %v2148_v48 = vpack.c.bf16 %v1718_v39, %v1717_v51  ;;  %v1867_v4 = vunpack.c.h.bf16 %v2806_v41  ;;  %v2875_v39 = vld [vmem:[#allocation4 + $0x30] sm:$0xff]  }
 0x115   :  { %v1350_v21 = vsel %vm966_vm13, %v2019_v31, 0.0  ;;  %v1396_v43 = vsel %vm66_vm0, %v1257_v25, 0.0  ;;  %v1991_v41 = vunpack.c.h.bf16 %v2816_v50 }
 0x116   :  { %v1612_v18 = vsel %vm66_vm0, %v1350_v21, 0.0  ;;  %v2818_v9 = vadd.f32 %v1396_v43, %v1395_v47  ;;  %v570_v20 = vpop.permute.xlu1 %569  ;;  %2149 = vmatpush3.bf16.msra.mxu0 %v2148_v48 }
 0x117   :  { %v2820_v36 = vadd.f32 %v1612_v18, %v1611_v38  ;;  %v440_v52 = vpop.permute.xlu0 %439  ;;  %vm920_vm14 = vcmp.ne.f32.partialorder %v570_v20, 0.0  ;;  %2150 = vmatprep.subr.bf16.mxu0 %v2162_v46  ;;  %v2869_v18 = vld [vmem:[#allocation4 + $0x128] sm:$0xff]  }
 0x118   :  { %vm889_vm15 = vcmp.ne.f32.partialorder %v440_v52, 0.0  ;;  %v1304_v61 = vsel %vm920_vm14, %v1927_v32, 0.0  ;;  %v2054_v32 = vunpack.c.l.bf16 %v2861_v1 }
 0x119   :  { %v1273_v28 = vsel %vm889_vm15, %v1866_v55, 0.0  ;;  %v1505_v15 = vsel %vm66_vm0, %v1304_v61, 0.0 }
 0x11a   :  { %v1433_v13 = vsel %vm66_vm0, %v1273_v28, 0.0  ;;  %v1506_v23 = vadd.f32 %v1505_v15, %v1504_v30  ;;  %v830_v38 = vpop.permute.xlu1 %829  ;;  %2152 = vmatpush3.bf16.msra.mxu0 %v2151_v3  ;;  %v1962_v28 = vunpack.c.l.bf16 %v2869_v18 }
 0x11b   :  { %v1434_v47 = vadd.f32 %v1433_v13, %v1432_v24  ;;  %v700_v62 = vpop.permute.xlu0 %699  ;;  %vm982_vm2 = vcmp.ne.f32.partialorder %v830_v38, 0.0 }
 0x11c   :  { %vm951_vm3 = vcmp.ne.f32.partialorder %v700_v62, 0.0  ;;  %v1366_v17 = vsel %vm982_vm2, %v2051_v34, 0.0  ;;  %v2885_v62 = vld [vmem:[#allocation4 + $0x70] sm:$0xff]  }
 0x11d   :  { %v1335_v10 = vsel %vm951_vm3, %v1990_v29, 0.0  ;;  %v1649_v2 = vsel %vm66_vm0, %v1366_v17, 0.0  ;;  %v1899_v29 = vunpack.c.h.bf16 %v2835_v56  ;;  %v2023_v56 = vunpack.c.h.bf16 %v2845_v35 }
 0x11e   :  { %v1577_v49 = vsel %vm66_vm0, %v1335_v10, 0.0  ;;  %v1650_v30 = vadd.f32 %v1649_v2, %v2797_v57  ;;  %v637_v16 = vpop.permute.xlu1 %636  ;;  %v1931_v2 = vunpack.c.h.bf16 %v2853_v14 }
 0x11f   :  { %v1578_v24 = vadd.f32 %v1577_v49, %v2799_v58  ;;  %v507_v40 = vpop.permute.xlu0 %506  ;;  %vm936_vm4 = vcmp.ne.f32.partialorder %v637_v16, 0.0  ;;  %v1870_v49 = vunpack.c.l.bf16 %v2885_v62 }
 0x120   :  { %vm905_vm5 = vcmp.ne.f32.partialorder %v507_v40, 0.0  ;;  %v1320_v33 = vsel %vm936_vm4, %v1959_v63, 0.0 }
 0x121   :  { %v1289_v7 = vsel %vm905_vm5, %v1898_v0, 0.0  ;;  %v1542_v22 = vsel %vm66_vm0, %v1320_v33, 0.0 }
 0x122   :  { %v1470_v60 = vsel %vm66_vm0, %v1289_v7, 0.0  ;;  %v1543_v57 = vadd.f32 %v1542_v22, %v2808_v44  ;;  %v377_v54 = vpop.permute.xlu1 %376 }
 0x123   :  { %v1471_v58 = vadd.f32 %v1470_v60, %v2810_v53  ;;  %v767_v42 = vpop.permute.xlu0 %766  ;;  %vm874_vm6 = vcmp.ne.f32.partialorder %v377_v54, 0.0 }
 0x124   :  { %vm967_vm7 = vcmp.ne.f32.partialorder %v767_v42, 0.0  ;;  %v1258_v59 = vsel %vm874_vm6, %v1835_v19, 0.0 }
 0x125   :  { %v1351_v37 = vsel %vm967_vm7, %v2022_v26, 0.0  ;;  %v1398_v31 = vsel %vm66_vm0, %v1258_v59, 0.0 }
 0x126   :  { %v1614_v27 = vsel %vm66_vm0, %v1351_v37, 0.0  ;;  %v1399_v44 = vadd.f32 %v1398_v31, %v2818_v9  ;;  %v574_v45 = vpop.permute.xlu1 %573 }
 0x127   :  { %v1615_v53 = vadd.f32 %v1614_v27, %v2820_v36  ;;  %v444_v5 = vpop.permute.xlu0 %443  ;;  %vm921_vm8 = vcmp.ne.f32.partialorder %v574_v45, 0.0  ;;  %v2929_v45 = vld [vmem:[#allocation4 + $0x1a8] sm:$0xff]  }
 0x128   :  { %vm890_vm9 = vcmp.ne.f32.partialorder %v444_v5, 0.0  ;;  %v1305_v25 = vsel %vm921_vm8, %v1930_v11, 0.0  ;;  %v2931_v5 = vld [vmem:[#allocation4 + $0xf0] sm:$0xff]  }
 0x129   :  { %v1274_v21 = vsel %vm890_vm9, %v1867_v4, 0.0  ;;  %v1507_v55 = vsel %vm66_vm0, %v1305_v25, 0.0  ;;  %v2933_v25 = vld [vmem:[#allocation4 + $0x1e8] sm:$0xff]  }
 0x12a   :  { %v1435_v43 = vsel %vm66_vm0, %v1274_v21, 0.0  ;;  %v1508_v20 = vadd.f32 %v1507_v55, %v1506_v23  ;;  %v834_v52 = vpop.permute.xlu1 %833  ;;  %v1838_v23 = vunpack.c.l.bf16 %v2875_v39  ;;  %v2935_v21 = vld [vmem:[#allocation4 + $0x130] sm:$0xff]   ;;  %v2055_v55 = vunpack.c.h.bf16 %v2861_v1  ;;  %v2955_v1 = vld [vmem:[#allocation4 + $0xb8] sm:$0xff]  }
 0x12b   :  { %v1436_v9 = vadd.f32 %v1435_v43, %v1434_v47  ;;  %v704_v36 = vpop.permute.xlu0 %703  ;;  %vm983_vm10 = vcmp.ne.f32.partialorder %v834_v52, 0.0  ;;  %v2945_v52 = vld [vmem:[#allocation4 + $0x38] sm:$0xff]  }
 0x12c   :  { %vm952_vm11 = vcmp.ne.f32.partialorder %v704_v36, 0.0  ;;  %v1367_v34 = vsel %vm983_vm10, %v2054_v32, 0.0  ;;  %v2947_v36 = vld [vmem:[#allocation4 + $0x78] sm:$0xff]  }
 0x12d   :  { %v1336_v61 = vsel %vm952_vm11, %v1991_v41, 0.0  ;;  %v1651_v50 = vsel %vm66_vm0, %v1367_v34, 0.0  ;;  %v1839_v34 = vunpack.c.h.bf16 %v2875_v39  ;;  %v2963_v39 = vld [vmem:[#allocation4 + $0xf8] sm:$0xff]  }
 0x12e   :  { %v1579_v51 = vsel %vm66_vm0, %v1336_v61, 0.0  ;;  %v2877_v12 = vadd.f32 %v1651_v50, %v1650_v30  ;;  %v641_v13 = vpop.permute.xlu1 %640  ;;  %v2026_v61 = vunpack.c.l.bf16 %v2929_v45  ;;  %v2953_v50 = vld [vmem:[#allocation4 + $0x170] sm:$0xff]  }
 0x12f   :  { %v2879_v15 = vadd.f32 %v1579_v51, %v1578_v24  ;;  %v511_v46 = vpop.permute.xlu0 %510  ;;  %vm937_vm12 = vcmp.ne.f32.partialorder %v641_v13, 0.0  ;;  %v1966_v13 = vunpack.c.l.bf16 %v2935_v21 }
 0x130   :  { %vm906_vm13 = vcmp.ne.f32.partialorder %v511_v46, 0.0  ;;  %v1321_v48 = vsel %vm937_vm12, %v1962_v28, 0.0  ;;  %v1934_v28 = vunpack.c.l.bf16 %v2931_v5 }
 0x131   :  { %v1290_v8 = vsel %vm906_vm13, %v1899_v29, 0.0  ;;  %v1544_v47 = vsel %vm66_vm0, %v1321_v48, 0.0  ;;  %v1871_v29 = vunpack.c.h.bf16 %v2885_v62  ;;  %v2961_v48 = vld [vmem:[#allocation4 + $0x1b0] sm:$0xff]  }
 0x132   :  { %v1472_v38 = vsel %vm66_vm0, %v1290_v8, 0.0  ;;  %v2887_v6 = vadd.f32 %v1544_v47, %v1543_v57  ;;  %v381_v17 = vpop.permute.xlu1 %380  ;;  %v1842_v8 = vunpack.c.l.bf16 %v2945_v52 }
 0x133   :  { %v2889_v3 = vadd.f32 %v1472_v38, %v1471_v58  ;;  %v771_v10 = vpop.permute.xlu0 %770  ;;  %vm875_vm14 = vcmp.ne.f32.partialorder %v381_v17, 0.0  ;;  %v1874_v17 = vunpack.c.l.bf16 %v2947_v36 }
 0x134   :  { %vm968_vm15 = vcmp.ne.f32.partialorder %v771_v10, 0.0  ;;  %v1259_v63 = vsel %vm875_vm14, %v1838_v23, 0.0  ;;  %v2971_v10 = vld [vmem:[#allocation4 + $0x1f0] sm:$0xff]  }
 0x135   :  { %v1352_v0 = vsel %vm968_vm15, %v2023_v56, 0.0  ;;  %v1400_v35 = vsel %vm66_vm0, %v1259_v63, 0.0  ;;  %v2027_v56 = vunpack.c.h.bf16 %v2929_v45  ;;  %v2973_v63 = vld [vmem:[#allocation4 + $0x138] sm:$0xff]  }
 0x136   :  { %v1616_v30 = vsel %vm66_vm0, %v1352_v0, 0.0  ;;  %v2895_v24 = vadd.f32 %v1400_v35, %v1399_v44  ;;  %v578_v40 = vpop.permute.xlu1 %577  ;;  %v2925_v44 = vld [vmem:[#allocation4 + $0x168] sm:$0xff]  }
 0x137   :  { %v2897_v16 = vadd.f32 %v1616_v30, %v1615_v53  ;;  %v448_v33 = vpop.permute.xlu0 %447  ;;  %vm922_vm1 = vcmp.ne.f32.partialorder %v578_v40, 0.0  ;;  %v2927_v53 = vld [vmem:[#allocation4 + $0xb0] sm:$0xff]   ;;  %v1994_v43 = vunpack.c.l.bf16 %v2925_v44  ;;  %v1995_v51 = vunpack.c.h.bf16 %v2925_v44 }
 0x138   :  { %vm891_vm2 = vcmp.ne.f32.partialorder %v448_v33, 0.0  ;;  %v1306_v7 = vsel %vm922_vm1, %v1931_v2, 0.0  ;;  %v1903_v46 = vunpack.c.h.bf16 %v2927_v53  ;;  %v1843_v30 = vunpack.c.h.bf16 %v2945_v52  ;;  %v2987_v2 = vld [vmem:[#allocation4 + $0x178] sm:$0xff]  }
 0x139   :  { %v1275_v19 = vsel %vm891_vm2, %v1870_v49, 0.0  ;;  %v1509_v26 = vsel %vm66_vm0, %v1306_v7, 0.0  ;;  %v2989_v49 = vld [vmem:[#allocation4 + $0x1b8] sm:$0xff]   ;;  %v1971_v7 = vunpack.c.h.bf16 %v2973_v63 }
 0x13a   :  { %v1437_v22 = vsel %vm66_vm0, %v1275_v19, 0.0  ;;  %v2901_v60 = vadd.f32 %v1509_v26, %v1508_v20  ;;  %v2905_v57 = vpop.permute.xlu1 %837  ;;  %v1963_v20 = vunpack.c.h.bf16 %v2869_v18  ;;  %v2058_v18 = vunpack.c.l.bf16 %v2933_v25  ;;  %v2997_v19 = vld [vmem:[#allocation4 + $0x1f8] sm:$0xff]  }
 0x13b   :  { %v2903_v14 = vadd.f32 %v1437_v22, %v1436_v9  ;;  %v2907_v58 = vpop.permute.xlu0 %707  ;;  %v1902_v9 = vunpack.c.l.bf16 %v2927_v53  ;;  %vm984_vm3 = vcmp.ne.f32.partialorder %v2905_v57, 0.0  ;;  %v2066_v57 = vunpack.c.l.bf16 %v2997_v19 }
 0x13c   :  { %v1368_v26 = vsel %vm984_vm3, %v2055_v55, 0.0  ;;  %vm953_vm4 = vcmp.ne.f32.partialorder %v2907_v58, 0.0  ;;  %v2035_v58 = vunpack.c.h.bf16 %v2989_v49 }
 0x13d   :  { %v1337_v55 = vsel %vm953_vm4, %v1994_v43, 0.0 }
 0x13e   :  { %v2909_v54 = vpop.permute.xlu1 %644 }
 0x13f   :  { %v2911_v42 = vpop.permute.xlu0 %514  ;;  %vm938_vm5 = vcmp.ne.f32.partialorder %v2909_v54, 0.0  ;;  %v1653_v54 = vsel %vm66_vm0, %v1368_v26, 0.0 }
 0x140   :  { %vm907_vm6 = vcmp.ne.f32.partialorder %v2911_v42, 0.0  ;;  %v1322_v42 = vsel %vm938_vm5, %v1963_v20, 0.0  ;;  %v1654_v43 = vadd.f32 %v1653_v54, %v2877_v12  ;;  %v1581_v20 = vsel %vm66_vm0, %v1337_v55, 0.0 }
 0x141   :  { %v1291_v22 = vsel %vm907_vm6, %v1902_v9, 0.0  ;;  %v1546_v9 = vsel %vm66_vm0, %v1322_v42, 0.0 }
 0x142   :  { %v2913_v59 = vpop.permute.xlu1 %384  ;;  %v1474_v26 = vsel %vm66_vm0, %v1291_v22, 0.0  ;;  %v1582_v22 = vadd.f32 %v1581_v20, %v2879_v15 }
 0x143   :  { %v2915_v37 = vpop.permute.xlu0 %774  ;;  %vm876_vm7 = vcmp.ne.f32.partialorder %v2913_v59, 0.0 }
 0x144   :  { %vm969_vm8 = vcmp.ne.f32.partialorder %v2915_v37, 0.0  ;;  %v1260_v40 = vsel %vm876_vm7, %v1839_v34, 0.0 }
 0x145   :  { %v1353_v38 = vsel %vm969_vm8, %v2026_v61, 0.0  ;;  %v1402_v34 = vsel %vm66_vm0, %v1260_v40, 0.0  ;;  %v1547_v40 = vadd.f32 %v1546_v9, %v2887_v6  ;;  %v3231_v9 = vunpack.c.l.bf16 %v2955_v1 }
 0x146   :  { %v2917_v11 = vpop.permute.xlu1 %581  ;;  %v1618_v61 = vsel %vm66_vm0, %v1353_v38, 0.0  ;;  %v1403_v38 = vadd.f32 %v1402_v34, %v2895_v24 }
 0x147   :  { %v2919_v4 = vpop.permute.xlu0 %451  ;;  %vm923_vm9 = vcmp.ne.f32.partialorder %v2917_v11, 0.0  ;;  %v2067_v11 = vunpack.c.h.bf16 %v2997_v19 }
 0x148   :  { %v1307_v33 = vsel %vm923_vm9, %v1934_v28, 0.0  ;;  %vm892_vm11 = vcmp.ne.f32.partialorder %v2919_v4, 0.0 }
 0x149   :  { %v1276_v12 = vsel %vm892_vm11, %v1871_v29, 0.0  ;;  %vm1681_vm11 = vcmask 1041409  }
 0x14a   :  { %v2921_v31 = vpop.permute.xlu1 %841 }
 0x14b   :  { %v2923_v27 = vpop.permute.xlu0 %711  ;;  %vm985_vm12 = vcmp.ne.f32.partialorder %v2921_v31, 0.0  ;;  %v1511_v31 = vsel %vm66_vm0, %v1307_v33, 0.0 }
 0x14c   :  { %v1369_v54 = vsel %vm985_vm12, %v2058_v18, 0.0  ;;  %vm954_vm14 = vcmp.ne.f32.partialorder %v2923_v27, 0.0  ;;  %v1512_v18 = vadd.f32 %v1511_v31, %v2901_v60  ;;  %v1439_v27 = vsel %vm66_vm0, %v1276_v12, 0.0 }
 0x14d   :  { %v1655_v15 = vsel %vm66_vm0, %v1369_v54, 0.0  ;;  %v1338_v6 = vsel %vm954_vm14, %v1995_v51, 0.0  ;;  %v1440_v51 = vadd.f32 %v1439_v27, %v2903_v14  ;;  %v3232_v54 = vunpack.c.h.bf16 %v2933_v25 }
 0x14e   :  { %v2937_v32 = vpop.permute.xlu1 %648  ;;  %v1583_v33 = vsel %vm66_vm0, %v1338_v6, 0.0 }
 0x14f   :  { %v2939_v41 = vpop.permute.xlu0 %518  ;;  %vm939_vm15 = vcmp.ne.f32.partialorder %v2937_v32, 0.0  ;;  %v3079_v12 = vadd.f32 %v1583_v33, %v1582_v22  ;;  %v3235_v33 = vunpack.c.h.bf16 %v2935_v21 }
 0x150   :  { %v1323_v24 = vsel %vm939_vm15, %v1966_v13, 0.0  ;;  %vm908_vm1 = vcmp.ne.f32.partialorder %v2939_v41, 0.0 }
 0x151   :  { %v1292_v41 = vsel %vm908_vm1, %v1903_v46, 0.0  ;;  %v1548_v52 = vsel %vm66_vm0, %v1323_v24, 0.0  ;;  %v3230_v46 = vunpack.c.h.bf16 %v2947_v36 }
 0x152   :  { %v389_v23 = vpop.permute.xlu1 %388  ;;  %v1549_v36 = vadd.f32 %v1548_v52, %v1547_v40  ;;  %v3234_v40 = vunpack.c.l.bf16 %v2963_v39 }
 0x153   :  { %v2967_v47 = vpop.permute.xlu0 %778  ;;  %vm877_vm10 = vcmp.ne.f32.partialorder %v389_v23, 0.0 }
 0x154   :  { %v1261_v23 = vsel %vm877_vm10, %v1842_v8, 0.0  ;;  %v1475_v8 = vadd.f32 %v1474_v26, %v2889_v3  ;;  %vm970_vm2 = vcmp.ne.f32.partialorder %v2967_v47, 0.0 }
 0x155   :  { %v1404_v62 = vsel %vm66_vm0, %v1261_v23, 0.0  ;;  %v1354_v47 = vsel %vm970_vm2, %v2027_v56, 0.0  ;;  %v1476_v56 = vsel %vm66_vm0, %v1292_v41, 0.0  ;;  %v3236_v41 = vunpack.c.h.bf16 %v2955_v1 }
 0x156   :  { %v2991_v0 = vpop.permute.xlu1 %585  ;;  %v1620_v20 = vsel %vm66_vm0, %v1354_v47, 0.0 }
 0x157   :  { %v456_v35 = vpop.permute.xlu0 %455  ;;  %vm924_vm4 = vcmp.ne.f32.partialorder %v2991_v0, 0.0 }
 0x158   :  { %vm893_vm13 = vcmp.ne.f32.partialorder %v456_v35, 0.0  ;;  %v1619_v35 = vadd.f32 %v1618_v61, %v2897_v16  ;;  %v1405_v16 = vadd.f32 %v1404_v62, %v1403_v38  ;;  %v3233_v62 = vunpack.c.l.bf16 %v2953_v50 }
 0x159   :  { %v1277_v29 = vsel %vm893_vm13, %v1874_v17, 0.0  ;;  %v1656_v17 = vadd.f32 %v1655_v15, %v1654_v43 }
 0x15a   :  { %v3013_v59 = vpop.permute.xlu1 %845  ;;  %v1441_v60 = vsel %vm66_vm0, %v1277_v29, 0.0  ;;  %v1621_v22 = vadd.f32 %v1620_v20, %v1619_v35 }
 0x15b   :  { %v3015_v37 = vpop.permute.xlu0 %715  ;;  %v1442_v43 = vadd.f32 %v1441_v60, %v1440_v51  ;;  %vm986_vm7 = vcmp.ne.f32.partialorder %v3013_v59, 0.0 }
 0x15c   :  { %vm955_vm8 = vcmp.ne.f32.partialorder %v3015_v37, 0.0  ;;  %v1370_v38 = vsel %vm986_vm7, %v3232_v54, 0.0  ;;  %vm1685_vm7 = vcmask 1043459  }
 0x15d   :  { %v1339_v29 = vsel %vm955_vm8, %v3233_v62, 0.0  ;;  %v1657_v59 = vsel %vm66_vm0, %v1370_v38, 0.0 }
 0x15e   :  { %v3027_v28 = vpop.permute.xlu1 %652  ;;  %v1585_v51 = vsel %vm66_vm0, %v1339_v29, 0.0 }
 0x15f   :  { %v523_v4 = vpop.permute.xlu0 %522  ;;  %vm940_vm10 = vcmp.ne.f32.partialorder %v3027_v28, 0.0 }
 0x160   :  { %vm909_vm5 = vcmp.ne.f32.partialorder %v523_v4, 0.0 }
 0x161   :  { %v1293_v26 = vsel %vm909_vm5, %v3231_v9, 0.0 }
 0x162   :  { %v393_v3 = vpop.permute.xlu1 %392  ;;  %v1478_v27 = vsel %vm66_vm0, %v1293_v26, 0.0  ;;  %v3240_v26 = vunpack.c.l.bf16 %v2971_v10 }
 0x163   :  { %v3049_v32 = vpop.permute.xlu0 %782  ;;  %vm878_vm3 = vcmp.ne.f32.partialorder %v393_v3, 0.0  ;;  %v1477_v3 = vadd.f32 %v1476_v56, %v1475_v8  ;;  %v1324_v8 = vsel %vm940_vm10, %v3235_v33, 0.0  ;;  %v3239_v56 = vunpack.c.h.bf16 %v2963_v39 }
 0x164   :  { %v1262_v44 = vsel %vm878_vm3, %v1843_v30, 0.0  ;;  %v3229_v30 = vunpack.c.h.bf16 %v2931_v5  ;;  %vm971_vm12 = vcmp.ne.f32.partialorder %v3049_v32, 0.0  ;;  %v1658_v32 = vadd.f32 %v1657_v59, %v1656_v17 }
 0x165   :  { %v1406_v13 = vsel %vm66_vm0, %v1262_v44, 0.0  ;;  %v1479_v35 = vadd.f32 %v1478_v27, %v1477_v3 }
 0x166   :  { %v1407_v0 = vadd.f32 %v1406_v13, %v1405_v16  ;;  %v590_v55 = vpop.permute.xlu1 %589  ;;  %v1308_v14 = vsel %vm924_vm4, %v3229_v30, 0.0  ;;  %vm1683_vm4 = vcmask 1042434  }
 0x167   :  { %v460_v42 = vpop.permute.xlu0 %459  ;;  %v1513_v34 = vsel %vm66_vm0, %v1308_v14, 0.0  ;;  %vm925_vm9 = vcmp.ne.f32.partialorder %v590_v55, 0.0 }
 0x168   :  { %vm894_vm6 = vcmp.ne.f32.partialorder %v460_v42, 0.0  ;;  %v1408_v53 = vrot.slane %v1407_v0, 4  ;;  %v1514_v24 = vadd.f32 %v1513_v34, %v1512_v18  ;;  %v1309_v25 = vsel %vm925_vm9, %v3234_v40, 0.0 }
 0x169   :  { %v1278_v45 = vsel %vm894_vm6, %v3230_v46, 0.0  ;;  %v1515_v18 = vsel %vm66_vm0, %v1309_v25, 0.0  ;;  %v3238_v46 = vunpack.c.l.bf16 %v2973_v63  ;;  %v3241_v34 = vunpack.c.h.bf16 %v2953_v50 }
 0x16a   :  { %v1443_v5 = vsel %vm66_vm0, %v1278_v45, 0.0  ;;  %v1409_v61 = vadd.f32 %v1408_v53, %v1407_v0  ;;  %v850_v4 = vpop.permute.xlu1 %849  ;;  %v3237_v0 = vunpack.c.l.bf16 %v2961_v48  ;;  %v1516_v53 = vadd.f32 %v1515_v18, %v1514_v24 }
 0x16b   :  { %v1444_v23 = vadd.f32 %v1443_v5, %v1442_v43  ;;  %v720_v31 = vpop.permute.xlu0 %719  ;;  %vm987_vm15 = vcmp.ne.f32.partialorder %v850_v4, 0.0  ;;  %v1550_v43 = vsel %vm66_vm0, %v1324_v8, 0.0  ;;  %v1586_v40 = vadd.f32 %v1585_v51, %v3079_v12 }
 0x16c   :  { %v1410_v15 = vrot.slane %v1409_v61, 2  ;;  %v1355_v55 = vsel %vm971_vm12, %v3237_v0, 0.0  ;;  %vm956_vm1 = vcmp.ne.f32.partialorder %v720_v31, 0.0  ;;  %v1371_v5 = vsel %vm987_vm15, %v3240_v26, 0.0 }
 0x16d   :  { %v1445_v6 = vrot.slane %v1444_v23, 4  ;;  %v1622_v9 = vsel %vm66_vm0, %v1355_v55, 0.0  ;;  %v1551_v27 = vadd.f32 %v1550_v43, %v1549_v36  ;;  %v1659_v59 = vsel %vm66_vm0, %v1371_v5, 0.0 }
 0x16e   :  { %v1411_v16 = vadd.f32 %v1410_v15, %v1409_v61  ;;  %v657_v60 = vpop.permute.xlu1 %656  ;;  %v1340_v61 = vsel %vm956_vm1, %v3241_v34, 0.0  ;;  %v1623_v25 = vadd.f32 %v1622_v9, %v1621_v22  ;;  %v3244_v18 = vunpack.c.l.bf16 %v2987_v2 }
 0x16f   :  { %v1446_v37 = vadd.f32 %v1445_v6, %v1444_v23  ;;  %v527_v44 = vpop.permute.xlu0 %526  ;;  %vm941_vm14 = vcmp.ne.f32.partialorder %v657_v60, 0.0  ;;  %v3242_v6 = vunpack.c.h.bf16 %v2961_v48  ;;  %v3243_v48 = vunpack.c.h.bf16 %v2971_v10 }
 0x170   :  { %vm910_vm13 = vcmp.ne.f32.partialorder %v527_v44, 0.0  ;;  %v1412_v21 = vrot.slane %v1411_v16, 1  ;;  %v1325_v1 = vsel %vm941_vm14, %v3238_v46, 0.0  ;;  %v3245_v51 = vunpack.c.l.bf16 %v2989_v49 }
 0x171   :  { %v1447_v13 = vrot.slane %v1446_v37, 2  ;;  %v1294_v47 = vsel %vm910_vm13, %v3236_v41, 0.0  ;;  %v1552_v15 = vsel %vm66_vm0, %v1325_v1, 0.0  ;;  %v1660_v0 = vadd.f32 %v1659_v59, %v1658_v32 }
 0x172   :  { %v1480_v42 = vsel %vm66_vm0, %v1294_v47, 0.0  ;;  %v594_v30 = vpop.permute.xlu1 %593  ;;  %v1413_v31 = vadd.f32 %v1412_v21, %v1411_v16  ;;  %v1587_v16 = vsel %vm66_vm0, %v1340_v61, 0.0  ;;  %v1553_v36 = vadd.f32 %v1552_v15, %v1551_v27 }
 0x173   :  { %v1448_v52 = vadd.f32 %v1447_v13, %v1446_v37  ;;  %v1481_v28 = vadd.f32 %v1480_v42, %v1479_v35  ;;  %v787_v14 = vpop.permute.xlu0 %786  ;;  %vm926_vm2 = vcmp.ne.f32.partialorder %v594_v30, 0.0  ;;  %v1588_v10 = vadd.f32 %v1587_v16, %v1586_v40 }
 0x174   :  { %v1310_v20 = vsel %vm926_vm2, %v3239_v56, 0.0  ;;  %vm972_vm3 = vcmp.ne.f32.partialorder %v787_v14, 0.0  ;;  %vm1687_vm14 = vcmask 1044484   ;;  %vm1689_vm15 = vcmask 1045509  }
 0x175   :  { %v1449_v17 = vrot.slane %v1448_v52, 1  ;;  %v1482_v45 = vrot.slane %v1481_v28, 4  ;;  %v1517_v23 = vsel %vm66_vm0, %v1310_v20, 0.0  ;;  %v1356_v3 = vsel %vm972_vm3, %v3242_v6, 0.0 }
 0x176   :  { %v1518_v62 = vadd.f32 %v1517_v23, %v1516_v53  ;;  %v854_v29 = vpop.permute.xlu1 %853  ;;  %v1624_v35 = vsel %vm66_vm0, %v1356_v3, 0.0  ;;  %v3246_v20 = vunpack.c.h.bf16 %v2987_v2  ;;  %vm1691_vm1 = vcmask 1046534  }
 0x177   :  { %v1450_v54 = vadd.f32 %v1449_v17, %v1448_v52  ;;  %v1483_v38 = vadd.f32 %v1482_v45, %v1481_v28  ;;  %v724_v39 = vpop.permute.xlu0 %723  ;;  %vm988_vm5 = vcmp.ne.f32.partialorder %v854_v29, 0.0  ;;  %v1625_v53 = vadd.f32 %v1624_v35, %v1623_v25 }
 0x178   :  { %v1519_v24 = vrot.slane %v1518_v62, 4  ;;  %vm957_vm6 = vcmp.ne.f32.partialorder %v724_v39, 0.0  ;;  %v1372_v44 = vsel %vm988_vm5, %v3243_v48, 0.0  ;;  %vm1693_vm2 = vcmask 1047559  }
 0x179   :  { %v1682_v4 = vsel %vm1681_vm11, %v1450_v54, %v1413_v31  ;;  %v1484_v50 = vrot.slane %v1483_v38, 2  ;;  %v1341_v13 = vsel %vm957_vm6, %v3244_v18, 0.0  ;;  %v1661_v55 = vsel %vm66_vm0, %v1372_v44, 0.0 }
 0x17a   :  { %v1520_v60 = vadd.f32 %v1519_v24, %v1518_v62  ;;  %v791_v33 = vpop.permute.xlu1 %790  ;;  %v1589_v28 = vsel %vm66_vm0, %v1341_v13, 0.0  ;;  %v1662_v17 = vadd.f32 %v1661_v55, %v1660_v0 }
 0x17b   :  { %v1485_v37 = vadd.f32 %v1484_v50, %v1483_v38  ;;  %v661_v8 = vpop.permute.xlu0 %660  ;;  %vm973_vm8 = vcmp.ne.f32.partialorder %v791_v33, 0.0  ;;  %v1590_v45 = vadd.f32 %v1589_v28, %v1588_v10 }
 0x17c   :  { %vm942_vm9 = vcmp.ne.f32.partialorder %v661_v8, 0.0  ;;  %v1521_v22 = vrot.slane %v1520_v60, 2  ;;  %v1357_v41 = vsel %vm973_vm8, %v3245_v51, 0.0  ;;  %v1375_v51 = vld [vmem:[#allocation2] sm:$0xff] }
 0x17d   :  { %v1486_v12 = vrot.slane %v1485_v37, 1  ;;  %v1326_v47 = vsel %vm942_vm9, %v1971_v7, 0.0  ;;  %v1626_v46 = vsel %vm66_vm0, %v1357_v41, 0.0 }
 0x17e   :  { %v1554_v42 = vsel %vm66_vm0, %v1326_v47, 0.0  ;;  %v1522_v52 = vadd.f32 %v1521_v22, %v1520_v60  ;;  %v858_v14 = vpop.permute.xlu1 %857  ;;  %v1627_v5 = vadd.f32 %v1626_v46, %v1625_v53 }
 0x17f   :  { %v1487_v21 = vadd.f32 %v1486_v12, %v1485_v37  ;;  %v1555_v30 = vadd.f32 %v1554_v42, %v1553_v36  ;;  %v728_v43 = vpop.permute.xlu0 %727  ;;  %vm989_vm10 = vcmp.ne.f32.partialorder %v858_v14, 0.0 }
 0x180   :  { %vm958_vm11 = vcmp.ne.f32.partialorder %v728_v43, 0.0  ;;  %v1523_v7 = vrot.slane %v1522_v52, 1  ;;  %v1373_v1 = vsel %vm989_vm10, %v2066_v57, 0.0 }
 0x181   :  { %v1684_v63 = vsel %vm1683_vm4, %v1487_v21, %v1682_v4  ;;  %v1556_v32 = vrot.slane %v1555_v30, 4  ;;  %v1663_v56 = vsel %vm66_vm0, %v1373_v1, 0.0  ;;  %v1342_v9 = vsel %vm958_vm11, %v3246_v20, 0.0  ;;  %v1810_v21 = vld [vmem:[%s3163_s3] ss:$0 sm:$0xff] }
 0x182   :  { %v1524_v26 = vadd.f32 %v1523_v7, %v1522_v52  ;;  %v1591_v61 = vsel %vm66_vm0, %v1342_v9, 0.0  ;;  %v862_v23 = vpop.permute.xlu1 %861  ;;  %v1664_v54 = vadd.f32 %v1663_v56, %v1662_v17 }
 0x183   :  { %v1557_v34 = vadd.f32 %v1556_v32, %v1555_v30  ;;  %v795_v31 = vpop.permute.xlu0 %794  ;;  %v1592_v38 = vadd.f32 %v1591_v61, %v1590_v45  ;;  %vm990_vm12 = vcmp.ne.f32.partialorder %v862_v23, 0.0 }
 0x184   :  { %vm974_vm13 = vcmp.ne.f32.partialorder %v795_v31, 0.0  ;;  %v1686_v57 = vsel %vm1685_vm7, %v1524_v26, %v1684_v63  ;;  %v1374_v29 = vsel %vm990_vm12, %v2067_v11, 0.0 }
 0x185   :  { %v1558_v62 = vrot.slane %v1557_v34, 2  ;;  %v1358_v2 = vsel %vm974_vm13, %v2035_v58, 0.0  ;;  %v1593_v39 = vrot.slane %v1592_v38, 4  ;;  %v1665_v27 = vsel %vm66_vm0, %v1374_v29, 0.0 }
 0x186   :  { %v1628_v15 = vsel %vm66_vm0, %v1358_v2, 0.0  ;;  %v1666_v3 = vadd.f32 %v1665_v27, %v1664_v54 }
 0x187   :  { %v1559_v6 = vadd.f32 %v1558_v62, %v1557_v34  ;;  %v1629_v4 = vadd.f32 %v1628_v15, %v1627_v5  ;;  %v1594_v50 = vadd.f32 %v1593_v39, %v1592_v38 }
 0x188   :  { %v1667_v40 = vrot.slane %v1666_v3, 4 }
 0x189   :  { %v1560_v24 = vrot.slane %v1559_v6, 1  ;;  %v1630_v25 = vrot.slane %v1629_v4, 4  ;;  %v1595_v59 = vrot.slane %v1594_v50, 2 }
 0x18a   :  { %v1668_v19 = vadd.f32 %v1667_v40, %v1666_v3 }
 0x18b   :  { %v1561_v16 = vadd.f32 %v1560_v24, %v1559_v6  ;;  %v1631_v11 = vadd.f32 %v1630_v25, %v1629_v4  ;;  %v1596_v36 = vadd.f32 %v1595_v59, %v1594_v50  ;;  %v1713_v22 = vpop.permute.xlu0 %1712 }
 0x18c   :  { %v1669_v58 = vrot.slane %v1668_v19, 2  ;;  %2158 = vrcp.f32 %v1713_v22 }
 0x18d   :  { %v1688_v49 = vsel %vm1687_vm14, %v1561_v16, %v1686_v57  ;;  %v1632_v37 = vrot.slane %v1631_v11, 2  ;;  %v1597_v60 = vrot.slane %v1596_v36, 1 }
 0x18e   :  { %v1670_v48 = vadd.f32 %v1669_v58, %v1668_v19 }
 0x18f   :  { %v1633_v44 = vadd.f32 %v1632_v37, %v1631_v11  ;;  %v1598_v33 = vadd.f32 %v1597_v60, %v1596_v36 }
 0x190   :  { %v1671_v8 = vrot.slane %v1670_v48, 1 }
 0x191   :  { %v1634_v35 = vrot.slane %v1633_v44, 1  ;;  %v1690_v18 = vsel %vm1689_vm15, %v1598_v33, %v1688_v49 }
 0x192   :  { %v1672_v13 = vadd.f32 %v1671_v8, %v1670_v48 }
 0x193   :  { %v1635_v12 = vadd.f32 %v1634_v35, %v1633_v44 }
 0x195   :  { %v1692_v41 = vsel %vm1691_vm1, %v1635_v12, %v1690_v18 }
 0x196   :  { %v1694_v47 = vsel %vm1693_vm2, %v1672_v13, %v1692_v41  ;;  %v2159_v10 = vpop.eup %2158 }
 0x197   :  { %v1696_v0 = vadd.f32 %v1694_v47, %v1375_v51 }
 0x199   :  { %1697 = vst.msk [vmem:[#allocation2] sm:$0xff] %vm66_vm0, %v1696_v0 }
 0x1a0   :  { %v1709_v55 = vld [vmem:[#allocation2] sm:$0xff] }
 0x1a1   :  { %v1716_v42 = vmul.f32 %v2159_v10, %v1709_v55 }
 0x1a3   :  { %2145 = vmatmul.mubr.msk.f32.vlgmr.msra.gmra.mrb[0].mxu0 %vm66_vm0, %v1716_v42 }
 0x276   :  { %v1797_v52 = vpop.f32.mrb[0].mxu0 }
 0x277   :  { %v1798_v28 = vadd.f32 %v1810_v21, %v1797_v52  ;;  %v2146_v30 = vpop.f32.mrb[1].mxu0 }
 0x279   :  { %1801 = vst [vmem:[%s3164_s4] sm:$0xff] %v1798_v28 }

</bundles_post_ra>
